<compile_context>
chip_gen: v7x
topology: tpu7x:2x2x1
jax: 0.10.0
libtpu: 0.0.40
codegen_flags: <defaults>
</compile_context>

<pallas_src>
import functools

import numpy as np
import jax
import jax.numpy as jnp
from jax import lax
from jax.experimental import pallas as pl
from jax.experimental.pallas import tpu as pltpu

_EPS = 1e-5          # BatchNorm3d default eps
_LEAKY = 0.2         # LeakyReLU negative slope (downrelu = act of MultiScaleConv)


# ----------------------------------------------------------------------------- small helpers

def _round_up(x, m):
    return (x + m - 1) // m * m


def _pick_m_tile(m, cap=512):
    t = cap
    while t > 128 and m % t:
        t //= 2
    return t if m % t == 0 else m


def _pick_k_tile(k, cap=2048):
    if k <= cap:
        return k
    t = cap
    while t > 128 and k % t:
        t //= 2
    return t


def _pad_to(a, axis, size):
    if a.shape[axis] == size:
        return a
    widths = [(0, 0)] * a.ndim
    widths[axis] = (0, size - a.shape[axis])
    return jnp.pad(a, widths)


# ----------------------------------------------------------------------------- Pallas kernels

def _gemm_stats_kernel(w_ref, p_ref, y_ref, ssum_ref, ssq_ref, acc_ref):
    """One conv stage as a single GEMM: y = W (R, Kt) @ P (Kt, Mt) (bf16 in, f32 accumulate),
    plus per-row (= per conv channel) partial sum / sum-of-squares for the two-pass BN."""
    kk = pl.program_id(1)

    @pl.when(kk == 0)
    def _():
        acc_ref[...] = jnp.zeros_like(acc_ref)

    acc_ref[...] += jnp.dot(w_ref[...], p_ref[...],
                            preferred_element_type=jnp.float32)

    @pl.when(kk == pl.num_programs(1) - 1)
    def _():
        y = acc_ref[...]
        y_ref[...] = y
        ssum_ref[...] = jnp.sum(y, axis=1, keepdims=True)[None]
        ssq_ref[...] = jnp.sum(y * y, axis=1, keepdims=True)[None]


def _down_finish_kernel(scale_ref, shift_ref, w1_ref, y_ref, o_ref):
    """Fused: per-branch BN apply + LeakyReLU(0.2) -> 1x1 merge conv -> up-path ReLU."""
    z = y_ref[...] * scale_ref[...] + shift_ref[...]
    z = jnp.where(z >= 0, z, _LEAKY * z)
    h = jnp.dot(w1_ref[...], z.astype(jnp.bfloat16),
                preferred_element_type=jnp.float32)
    o_ref[...] = jnp.maximum(h, 0.0).astype(o_ref.dtype)


def _up_finish_kernel(scale_ref, shift_ref, w1b_ref, y_ref, o_ref, ssum_ref, ssq_ref,
                      *, tm, m_real):
    """Fused: per-branch BN apply + ReLU -> phase-blocked 1x1 merge conv -> partial sum/sumsq
    for the trailing upnorm BatchNorm."""
    z = y_ref[...] * scale_ref[...] + shift_ref[...]
    z = jnp.maximum(z, 0.0)
    h = jnp.dot(w1b_ref[...], z.astype(jnp.bfloat16),
                preferred_element_type=jnp.float32)
    o_ref[...] = h
    if m_real is not None:   # static: mask zero-padded M columns out of the BN statistics
        col = pl.program_id(0) * tm + lax.broadcasted_iota(jnp.int32, h.shape, 1)
        h = jnp.where(col < m_real, h, 0.0)
    ssum_ref[...] = jnp.sum(h, axis=1, keepdims=True)[None]
    ssq_ref[...] = jnp.sum(h * h, axis=1, keepdims=True)[None]


def _scale_shift_kernel(scale_ref, shift_ref, y_ref, o_ref):
    """upnorm (BatchNorm3d) application, no activation."""
    o_ref[...] = y_ref[...] * scale_ref[...] + shift_ref[...]


# ----------------------------------------------------------------------------- kernel wrappers

def gemm_with_stats(w_mat, patches):
    """(R, K) @ (K, M) -> ((R, M) f32, per-channel sum (R,), sumsq (R,)).
    M is the lane axis of every block -> lane-dense stores."""
    r, k = w_mat.shape
    k2, m = patches.shape
    assert k == k2 and m % 128 == 0
    tm = _pick_m_tile(m)
    tk = _pick_k_tile(k)
    grid = (m // tm, k // tk)
    y, ssum, ssq = pl.pallas_call(
        _gemm_stats_kernel,
        out_shape=(jax.ShapeDtypeStruct((r, m), jnp.float32),
                   jax.ShapeDtypeStruct((grid[0], r, 1), jnp.float32),
                   jax.ShapeDtypeStruct((grid[0], r, 1), jnp.float32)),
        grid=grid,
        in_specs=[pl.BlockSpec((r, tk), lambda i, kk: (0, kk)),
                  pl.BlockSpec((tk, tm), lambda i, kk: (kk, i))],
        out_specs=(pl.BlockSpec((r, tm), lambda i, kk: (0, i)),
                   pl.BlockSpec((1, r, 1), lambda i, kk: (i, 0, 0)),
                   pl.BlockSpec((1, r, 1), lambda i, kk: (i, 0, 0))),
        scratch_shapes=[pltpu.VMEM((r, tm), jnp.float32)],
        compiler_params=pltpu.CompilerParams(
            dimension_semantics=("parallel", "arbitrary")),
    )(w_mat, patches)
    return y, jnp.sum(ssum, axis=0)[:, 0], jnp.sum(ssq, axis=0)[:, 0]


def down_finish(y, scale, shift, w1):
    r, m = y.shape
    c1 = w1.shape[0]
    tm = _pick_m_tile(m)
    return pl.pallas_call(
        _down_finish_kernel,
        out_shape=jax.ShapeDtypeStruct((c1, m), jnp.bfloat16),
        grid=(m // tm,),
        in_specs=[pl.BlockSpec((r, 1), lambda i: (0, 0)),
                  pl.BlockSpec((r, 1), lambda i: (0, 0)),
                  pl.BlockSpec((c1, r), lambda i: (0, 0)),
                  pl.BlockSpec((r, tm), lambda i: (0, i))],
        out_specs=pl.BlockSpec((c1, tm), lambda i: (0, i)),
        compiler_params=pltpu.CompilerParams(dimension_semantics=("parallel",)),
    )(scale.reshape(r, 1), shift.reshape(r, 1), w1, y)


def up_finish(y, scale, shift, w1_blk, m_real):
    r, m = y.shape
    r2 = w1_blk.shape[0]
    tm = _pick_m_tile(m)
    grid = (m // tm,)
    kernel = functools.partial(_up_finish_kernel, tm=tm,
                               m_real=None if m_real == m else m_real)
    h, ssum, ssq = pl.pallas_call(
        kernel,
        out_shape=(jax.ShapeDtypeStruct((r2, m), jnp.float32),
                   jax.ShapeDtypeStruct((grid[0], r2, 1), jnp.float32),
                   jax.ShapeDtypeStruct((grid[0], r2, 1), jnp.float32)),
        grid=grid,
        in_specs=[pl.BlockSpec((r, 1), lambda i: (0, 0)),
                  pl.BlockSpec((r, 1), lambda i: (0, 0)),
                  pl.BlockSpec((r2, r), lambda i: (0, 0)),
                  pl.BlockSpec((r, tm), lambda i: (0, i))],
        out_specs=(pl.BlockSpec((r2, tm), lambda i: (0, i)),
                   pl.BlockSpec((1, r2, 1), lambda i: (i, 0, 0)),
                   pl.BlockSpec((1, r2, 1), lambda i: (i, 0, 0))),
        compiler_params=pltpu.CompilerParams(dimension_semantics=("parallel",)),
    )(scale.reshape(r, 1), shift.reshape(r, 1), w1_blk, y)
    return h, jnp.sum(ssum, axis=0)[:, 0], jnp.sum(ssq, axis=0)[:, 0]


def scale_shift(y, scale, shift):
    r, m = y.shape
    tm = _pick_m_tile(m)
    return pl.pallas_call(
        _scale_shift_kernel,
        out_shape=jax.ShapeDtypeStruct((r, m), jnp.float32),
        grid=(m // tm,),
        in_specs=[pl.BlockSpec((r, 1), lambda i: (0, 0)),
                  pl.BlockSpec((r, 1), lambda i: (0, 0)),
                  pl.BlockSpec((r, tm), lambda i: (0, i))],
        out_specs=pl.BlockSpec((r, tm), lambda i: (0, i)),
        compiler_params=pltpu.CompilerParams(dimension_semantics=("parallel",)),
    )(scale.reshape(r, 1), shift.reshape(r, 1), y)


# ----------------------------------------------------------------------------- im2col (XLA)

def _im2col_T(x_cf, k, stride, pad):
    """x_cf: (C, N, D, H, W) -> transposed patch matrix (k^3*C, N*Do*Ho*Wo).
    Rows: tap-major (row-major over the k^3 offsets), cin fastest.  Columns (= GEMM lanes)
    enumerate (n, do, ho, wo)."""
    c, n, d, h, w = x_cf.shape
    do = (d + 2 * pad - k) // stride + 1
    ho = (h + 2 * pad - k) // stride + 1
    wo = (w + 2 * pad - k) // stride + 1
    xp = jnp.pad(x_cf, ((0, 0), (0, 0), (pad, pad), (pad, pad), (pad, pad)))
    slabs = []
    for a in range(k):
        for b in range(k):
            for cc in range(k):
                slabs.append(xp[:, :,
                                a:a + stride * do:stride,
                                b:b + stride * ho:stride,
                                cc:cc + stride * wo:stride])
    p = jnp.stack(slabs, axis=0)                       # (k^3, C, N, Do, Ho, Wo)
    return p.reshape(k ** 3 * c, n * do * ho * wo), (do, ho, wo)


# ----------------------------------------------------------------------------- weight folding

def _build_down_weight(w4, w6):
    """Both down branches (Conv3d k=4/pad=1 and k=6/pad=2, stride 2) evaluated on the shared
    k=6 im2col window (the k=4 taps sit at offsets 1..4 of that window).
    Returns (2*Cout, 216*Cin): rows = (branch, cout), cols = (tap(a,b,c) row-major, cin)."""
    w4 = np.asarray(w4, np.float32)
    w6 = np.asarray(w6, np.float32)
    cout, cin = w4.shape[0], w4.shape[1]
    w4e = np.zeros((cout, cin, 6, 6, 6), np.float32)
    w4e[:, :, 1:5, 1:5, 1:5] = w4

    def flat(w):
        return np.transpose(w, (0, 2, 3, 4, 1)).reshape(cout, 6 * 6 * 6 * cin)

    return np.concatenate([flat(w4e), flat(w6)], axis=0)


def _build_up_weight(uw4, uw6):
    """Sub-pixel (stride^3 = 8 phase) decomposition of both ConvTranspose3d branches onto a
    shared 3x3x3 stride-1 window of the undilated low-res input.
    output[o] with o = 2*m + phi gets x[m + delta] * w[t],  t = phi + pad - 2*delta.
    Returns (8*2*Cout, 27*Cin): rows = (phase(pd,ph,pw), branch, cout),
    cols = (tap(dd,dh,dw) over delta in {-1,0,1}^3 row-major, cin)."""
    uw4 = np.asarray(uw4, np.float32)
    uw6 = np.asarray(uw6, np.float32)
    cin, cout = uw4.shape[0], uw4.shape[1]
    out = np.zeros((8 * 2 * cout, 27 * cin), np.float32)
    branches = ((uw4, 4, 1), (uw6, 6, 2))
    for pd in range(2):
        for ph in range(2):
            for pw in range(2):
                phase = (pd * 2 + ph) * 2 + pw
                for br, (w, k, pad) in enumerate(branches):
                    r0 = (phase * 2 + br) * cout
                    for dd in range(3):
                        td = pd + pad - 2 * (dd - 1)
                        if not 0 <= td < k:
                            continue
                        for dh in range(3):
                            th = ph + pad - 2 * (dh - 1)
                            if not 0 <= th < k:
                                continue
                            for dw_ in range(3):
                                tw = pw + pad - 2 * (dw_ - 1)
                                if not 0 <= tw < k:
                                    continue
                                tap = (dd * 3 + dh) * 3 + dw_
                                out[r0:r0 + cout, tap * cin:(tap + 1) * cin] = \
                                    w[:, :, td, th, tw].T
    return out


def _bn_scale_shift(ssum, ssq, count, gamma, beta):
    """Training-mode BatchNorm from per-channel [sum, sumsq] over `count` elements.
    BN(y) == y*scale + shift  (biased variance, eps = 1e-5)."""
    mean = ssum / count
    var = ssq / count - mean * mean
    scale = gamma * lax.rsqrt(var + _EPS)
    return scale, beta - mean * scale


# ----------------------------------------------------------------------------- params

def init_params(key, input_nc, inner_nc, outer_nc):
    ks = jax.random.split(key, 6)

    def w(k, shape):
        return 0.05 * jax.random.normal(k, shape, jnp.float32)

    p = {
        # MultiScaleConv (down): Conv3d k=4/6, stride 2, no bias; 1x1 merge conv
        "dw4": w(ks[0], (inner_nc, input_nc, 4, 4, 4)),
        "dw6": w(ks[1], (inner_nc, input_nc, 6, 6, 6)),
        "dw1": w(ks[2], (inner_nc, 2 * inner_nc, 1, 1, 1)),
        # MultiScaleTransConv (up): ConvTranspose3d weights are (Cin, Cout, k, k, k)
        "uw4": w(ks[3], (inner_nc, outer_nc, 4, 4, 4)),
        "uw6": w(ks[4], (inner_nc, outer_nc, 6, 6, 6)),
        "uw1": w(ks[5], (outer_nc, 2 * outer_nc, 1, 1, 1)),
    }
    # BatchNorm3d default init: gamma = 1, beta = 0
    for name, c in [("dg4", inner_nc), ("dg6", inner_nc),
                    ("ug4", outer_nc), ("ug6", outer_nc), ("ng", outer_nc)]:
        p[name] = jnp.ones((c,), jnp.float32)
    for name, c in [("db4", inner_nc), ("db6", inner_nc),
                    ("ub4", outer_nc), ("ub6", outer_nc), ("nb", outer_nc)]:
        p[name] = jnp.zeros((c,), jnp.float32)
    return p
    # TODO(synk): BatchNorm running-stat updates (training-time side effect) are not modeled.


def prepare_params(p):
    """One-time host-side layout prep: fold both multi-scale branches of each stage into a
    single GEMM weight matrix, pad K to a multiple of 128, cast GEMM weights to bf16 and
    pre-build the phase-blocked 1x1 merge weight for the up path."""
    inner_nc = p["dw4"].shape[0]
    outer_nc = p["uw4"].shape[1]

    wd = _build_down_weight(p["dw4"], p["dw6"])           # (2*inner, 216*Cin)
    wu = _build_up_weight(p["uw4"], p["uw6"])             # (8*2*outer, 27*inner)
    wd = np.pad(wd, ((0, 0), (0, _round_up(wd.shape[1], 128) - wd.shape[1])))
    wu = np.pad(wu, ((0, 0), (0, _round_up(wu.shape[1], 128) - wu.shape[1])))

    w1d = np.asarray(p["dw1"], np.float32).reshape(inner_nc, 2 * inner_nc)
    w1u = np.asarray(p["uw1"], np.float32).reshape(outer_nc, 2 * outer_nc)
    w1u_blk = np.kron(np.eye(8, dtype=np.float32), w1u)   # all 8 phases share the 1x1 conv

    return {
        "inner_nc": inner_nc,
        "outer_nc": outer_nc,
        "w_down": jnp.asarray(wd, jnp.bfloat16),
        "w_up": jnp.asarray(wu, jnp.bfloat16),
        "w1_down": jnp.asarray(w1d, jnp.bfloat16),
        "w1_up_blk": jnp.asarray(w1u_blk, jnp.bfloat16),
        "g_down": jnp.concatenate([p["dg4"], p["dg6"]]),
        "b_down": jnp.concatenate([p["db4"], p["db6"]]),
        "g_up": jnp.concatenate([p["ug4"], p["ug6"]]),
        "b_up": jnp.concatenate([p["ub4"], p["ub6"]]),
        "g_norm": p["ng"],
        "b_norm": p["nb"],
    }


# ----------------------------------------------------------------------------- module forward

def unet_innermost_forward(x, pp):
    n, cin, d, h, w = x.shape
    inner, outer = pp["inner_nc"], pp["outer_nc"]

    # Module-boundary layout change (done once): NCDHW -> (C, N, D, H, W) so that the flattened
    # spatial axis M = N*D*H*W is the minor/lane axis of every Pallas operand and output.
    xcf = jnp.transpose(x, (1, 0, 2, 3, 4)).astype(jnp.float32)
    xa = jnp.where(xcf >= 0, xcf, _LEAKY * xcf)   # downrelu; XLA fuses it into the im2col pad

    # ------------- down: MultiScaleConv(input_nc -> inner_nc), both branches in one GEMM
    patches_d, (dd_, hd_, wd_) = _im2col_T(xa, k=6, stride=2, pad=2)
    m_lo = n * dd_ * hd_ * wd_
    m_pad = _round_up(m_lo, 128)
    patches_d = _pad_to(_pad_to(patches_d.astype(jnp.bfloat16), 1, m_pad),
                        0, pp["w_down"].shape[1])
    y_d, ds_, dq_ = gemm_with_stats(pp["w_down"], patches_d)      # (2*inner, Mp)
    sc_d, sh_d = _bn_scale_shift(ds_, dq_, m_lo, pp["g_down"], pp["b_down"])
    hid = down_finish(y_d, sc_d, sh_d, pp["w1_down"])             # (inner, Mp), ReLU applied

    # ------------- up: MultiScaleTransConv(inner_nc -> outer_nc), sub-pixel decomposition
    h_cf = hid[:, :m_lo].reshape(inner, n, dd_, hd_, wd_)
    patches_u, _ = _im2col_T(h_cf, k=3, stride=1, pad=1)          # shared 27-tap window
    patches_u = _pad_to(_pad_to(patches_u, 1, m_pad), 0, pp["w_up"].shape[1])
    y_u, us_, uq_ = gemm_with_stats(pp["w_up"], patches_u)        # (8*2*outer, Mp)
    us_ = us_.reshape(8, 2 * outer).sum(axis=0)                   # pool phases per (branch, c)
    uq_ = uq_.reshape(8, 2 * outer).sum(axis=0)
    sc_u, sh_u = _bn_scale_shift(us_, uq_, 8 * m_lo, pp["g_up"], pp["b_up"])
    z, ns_, nq_ = up_finish(y_u, jnp.tile(sc_u, 8), jnp.tile(sh_u, 8),
                            pp["w1_up_blk"], m_lo)                # (8*outer, Mp), rows (phase,c)

    # ------------- upnorm: BatchNorm3d(outer_nc), stats pooled over phases
    ns_ = ns_.reshape(8, outer).sum(axis=0)
    nq_ = nq_.reshape(8, outer).sum(axis=0)
    sc_n, sh_n = _bn_scale_shift(ns_, nq_, 8 * m_lo, pp["g_norm"], pp["b_norm"])
    z = scale_shift(z, jnp.tile(sc_n, 8), jnp.tile(sh_n, 8))

    # sub-pixel scatter (pixel shuffle) back to full resolution + NCDHW, then the skip concat.
    z = z[:, :m_lo].reshape(2, 2, 2, outer, n, dd_, hd_, wd_)
    z = jnp.transpose(z, (3, 4, 5, 0, 6, 1, 7, 2)).reshape(outer, n, d, h, w)
    up = jnp.transpose(z, (1, 0, 2, 3, 4)).astype(x.dtype)
    return jnp.concatenate([x, up], axis=1)


if __name__ == "__main__":
    key = jax.random.PRNGKey(0)
    kx, kp = jax.random.split(key)

    N, outer_nc, inner_nc = 2, 4, 8
    D = H = W = 8                      # must be even (stride-2 down then stride-2 up)
    input_nc = outer_nc                # input_nc defaults to outer_nc in the module

    x = jax.random.normal(kx, (N, input_nc, D, H, W), jnp.float32)
    raw = init_params(kp, input_nc, inner_nc, outer_nc)
    params = prepare_params(raw)

    fwd = jax.jit(lambda xx: unet_innermost_forward(xx, params))
    out = jax.block_until_ready(fwd(x))

    assert out.shape == (N, input_nc + outer_nc, D, H, W), out.shape
    assert bool(jnp.all(jnp.isfinite(out)))
    print("KERNEL_OK")
</pallas_src>

<mosaic_0001>
module attributes {stable_mosaic.version = 11 : i64} {
  func.func @_gemm_stats_kernel(%arg0: i32, %arg1: i32, %arg2: memref<16x896xbf16, #tpu.memory_space<vmem>>, %arg3: memref<896x128xbf16, #tpu.memory_space<vmem>>, %arg4: memref<16x128xf32, #tpu.memory_space<vmem>>, %arg5: memref<1x16x1xf32, #tpu.memory_space<vmem>>, %arg6: memref<1x16x1xf32, #tpu.memory_space<vmem>>, %arg7: memref<16x128xf32, #tpu.memory_space<vmem>>) attributes {dimension_semantics = [#tpu.dimension_semantics<parallel>, #tpu.dimension_semantics<arbitrary>], iteration_bounds = array<i64: 1, 1>, scalar_prefetch = 0 : i64, scratch_operands = 1 : i64, tpu.core_type = #tpu.core_type<tc>, window_params = [{transform_indices = @transform_0, window_bounds = array<i64: 16, 896>}, {transform_indices = @transform_1, window_bounds = array<i64: 896, 128>}, {transform_indices = @transform_2, window_bounds = array<i64: 16, 128>}, {transform_indices = @transform_3, window_bounds = array<i64: 1, 16, 1>}, {transform_indices = @transform_4, window_bounds = array<i64: 1, 16, 1>}]} {
    %c0_i32 = arith.constant 0 : i32
    %0 = arith.cmpi eq, %arg1, %c0_i32 : i32
    %1 = arith.extui %0 : i1 to i32
    %c0_i32_0 = arith.constant 0 : i32
    %2 = arith.cmpi ne, %1, %c0_i32_0 : i32
    scf.if %2 {
      %cst_10 = arith.constant 0.000000e+00 : f32
      %12 = vector.broadcast %cst_10 : f32 to vector<16x128xf32>
      %c0_11 = arith.constant 0 : index
      %c0_12 = arith.constant 0 : index
      %13 = vector.load %arg7[%c0_11, %c0_12] : memref<16x128xf32, #tpu.memory_space<vmem>>, vector<16x128xf32>
      tpu.vector_store %arg7[%c0_11, %c0_12], %12 {strides = array<i32>} : memref<16x128xf32, #tpu.memory_space<vmem>>, vector<16x128xf32>,
    } else {
    }
    %c0 = arith.constant 0 : index
    %c0_1 = arith.constant 0 : index
    %3 = vector.load %arg7[%c0, %c0_1] : memref<16x128xf32, #tpu.memory_space<vmem>>, vector<16x128xf32>
    %c0_2 = arith.constant 0 : index
    %c0_3 = arith.constant 0 : index
    %4 = vector.load %arg2[%c0_2, %c0_3] : memref<16x896xbf16, #tpu.memory_space<vmem>>, vector<16x896xbf16>
    %c0_4 = arith.constant 0 : index
    %c0_5 = arith.constant 0 : index
    %5 = vector.load %arg3[%c0_4, %c0_5] : memref<896x128xbf16, #tpu.memory_space<vmem>>, vector<896x128xbf16>
    %cst = arith.constant dense<0.000000e+00> : vector<16x128xf32>
    %6 = tpu.matmul %4, %5, %cst {dimension_numbers = #tpu.dot_dimension_numbers<[1], [0], [0], [1], [0, 0, 1, 1], [], []>} : vector<16x896xbf16>, vector<896x128xbf16>, vector<16x128xf32> -> vector<16x128xf32>
    %7 = arith.addf %3, %6 : vector<16x128xf32>
    %c0_6 = arith.constant 0 : index
    %c0_7 = arith.constant 0 : index
    %8 = vector.load %arg7[%c0_6, %c0_7] : memref<16x128xf32, #tpu.memory_space<vmem>>, vector<16x128xf32>
    tpu.vector_store %arg7[%c0_6, %c0_7], %7 {strides = array<i32>} : memref<16x128xf32, #tpu.memory_space<vmem>>, vector<16x128xf32>,
    %c0_i32_8 = arith.constant 0 : i32
    %9 = arith.cmpi eq, %arg1, %c0_i32_8 : i32
    %10 = arith.extui %9 : i1 to i32
    %c0_i32_9 = arith.constant 0 : i32
    %11 = arith.cmpi ne, %10, %c0_i32_9 : i32
    scf.if %11 {
      %c0_10 = arith.constant 0 : index
      %c0_11 = arith.constant 0 : index
      %12 = vector.load %arg7[%c0_10, %c0_11] : memref<16x128xf32, #tpu.memory_space<vmem>>, vector<16x128xf32>
      %c0_12 = arith.constant 0 : index
      %c0_13 = arith.constant 0 : index
      %13 = vector.load %arg4[%c0_12, %c0_13] : memref<16x128xf32, #tpu.memory_space<vmem>>, vector<16x128xf32>
      tpu.vector_store %arg4[%c0_12, %c0_13], %12 {strides = array<i32>} : memref<16x128xf32, #tpu.memory_space<vmem>>, vector<16x128xf32>,
      %cst_14 = arith.constant dense<0.000000e+00> : vector<16xf32>
      %14 = vector.multi_reduction <add>, %12, %cst_14 [1] : vector<16x128xf32> to vector<16xf32>
      %15 = vector.shape_cast %14 : vector<16xf32> to vector<16x1xf32>
      %16 = vector.shape_cast %15 : vector<16x1xf32> to vector<1x16x1xf32>
      %c0_15 = arith.constant 0 : index
      %c0_16 = arith.constant 0 : index
      %c0_17 = arith.constant 0 : index
      %17 = vector.load %arg5[%c0_15, %c0_16, %c0_17] : memref<1x16x1xf32, #tpu.memory_space<vmem>>, vector<1x16x1xf32>
      tpu.vector_store %arg5[%c0_15, %c0_16, %c0_17], %16 {strides = array<i32>} : memref<1x16x1xf32, #tpu.memory_space<vmem>>, vector<1x16x1xf32>,
      %18 = arith.mulf %12, %12 : vector<16x128xf32>
      %cst_18 = arith.constant dense<0.000000e+00> : vector<16xf32>
      %19 = vector.multi_reduction <add>, %18, %cst_18 [1] : vector<16x128xf32> to vector<16xf32>
      %20 = vector.shape_cast %19 : vector<16xf32> to vector<16x1xf32>
      %21 = vector.shape_cast %20 : vector<16x1xf32> to vector<1x16x1xf32>
      %c0_19 = arith.constant 0 : index
      %c0_20 = arith.constant 0 : index
      %c0_21 = arith.constant 0 : index
      %22 = vector.load %arg6[%c0_19, %c0_20, %c0_21] : memref<1x16x1xf32, #tpu.memory_space<vmem>>, vector<1x16x1xf32>
      tpu.vector_store %arg6[%c0_19, %c0_20, %c0_21], %21 {strides = array<i32>} : memref<1x16x1xf32, #tpu.memory_space<vmem>>, vector<1x16x1xf32>,
    } else {
    }
    return
  }
  func.func @transform_0(%arg0: i32, %arg1: i32) -> (i32, i32) {
    %c0_i32 = arith.constant 0 : i32
    %c0_i32_0 = arith.constant 0 : i32
    return %c0_i32, %arg1 : i32, i32
  }
  func.func @transform_1(%arg0: i32, %arg1: i32) -> (i32, i32) {
    %c0_i32 = arith.constant 0 : i32
    return %arg1, %arg0 : i32, i32
  }
  func.func @transform_2(%arg0: i32, %arg1: i32) -> (i32, i32) {
    %c0_i32 = arith.constant 0 : i32
    %c0_i32_0 = arith.constant 0 : i32
    return %c0_i32, %arg0 : i32, i32
  }
  func.func @transform_3(%arg0: i32, %arg1: i32) -> (i32, i32, i32) {
    %c0_i32 = arith.constant 0 : i32
    %c0_i32_0 = arith.constant 0 : i32
    %c0_i32_1 = arith.constant 0 : i32
    return %arg0, %c0_i32, %c0_i32_0 : i32, i32, i32
  }
  func.func @transform_4(%arg0: i32, %arg1: i32) -> (i32, i32, i32) {
    %c0_i32 = arith.constant 0 : i32
    %c0_i32_0 = arith.constant 0 : i32
    %c0_i32_1 = arith.constant 0 : i32
    return %arg0, %c0_i32, %c0_i32_0 : i32, i32, i32
  }
}

module attributes {stable_mosaic.version = 11 : i64} {
  func.func @_down_finish_kernel(%arg0: i32, %arg1: memref<16x1xf32, #tpu.memory_space<vmem>>, %arg2: memref<16x1xf32, #tpu.memory_space<vmem>>, %arg3: memref<8x16xbf16, #tpu.memory_space<vmem>>, %arg4: memref<16x128xf32, #tpu.memory_space<vmem>>, %arg5: memref<8x128xbf16, #tpu.memory_space<vmem>>) attributes {dimension_semantics = [#tpu.dimension_semantics<parallel>], iteration_bounds = array<i64: 1>, scalar_prefetch = 0 : i64, scratch_operands = 0 : i64, tpu.core_type = #tpu.core_type<tc>, window_params = [{pipeline_mode = #tpu.pipeline_mode<synchronous>, transform_indices = @transform_0, window_bounds = array<i64: 16, 1>}, {pipeline_mode = #tpu.pipeline_mode<synchronous>, transform_indices = @transform_1, window_bounds = array<i64: 16, 1>}, {pipeline_mode = #tpu.pipeline_mode<synchronous>, transform_indices = @transform_2, window_bounds = array<i64: 8, 16>}, {transform_indices = @transform_3, window_bounds = array<i64: 16, 128>}, {transform_indices = @transform_4, window_bounds = array<i64: 8, 128>}]} {
    %c0 = arith.constant 0 : index
    %c0_0 = arith.constant 0 : index
    %0 = vector.load %arg4[%c0, %c0_0] : memref<16x128xf32, #tpu.memory_space<vmem>>, vector<16x128xf32>
    %c0_1 = arith.constant 0 : index
    %c0_2 = arith.constant 0 : index
    %1 = vector.load %arg1[%c0_1, %c0_2] : memref<16x1xf32, #tpu.memory_space<vmem>>, vector<16x1xf32>
    %2 = vector.broadcast %1 : vector<16x1xf32> to vector<16x128xf32>
    %3 = arith.mulf %0, %2 : vector<16x128xf32>
    %c0_3 = arith.constant 0 : index
    %c0_4 = arith.constant 0 : index
    %4 = vector.load %arg2[%c0_3, %c0_4] : memref<16x1xf32, #tpu.memory_space<vmem>>, vector<16x1xf32>
    %5 = vector.broadcast %4 : vector<16x1xf32> to vector<16x128xf32>
    %6 = arith.addf %3, %5 : vector<16x128xf32>
    %cst = arith.constant 0.000000e+00 : f32
    %7 = vector.broadcast %cst : f32 to vector<16x128xf32>
    %8 = arith.cmpf oge, %6, %7 : vector<16x128xf32>
    %cst_5 = arith.constant 2.000000e-01 : f32
    %9 = vector.broadcast %cst_5 : f32 to vector<16x128xf32>
    %10 = arith.mulf %9, %6 : vector<16x128xf32>
    %11 = arith.select %8, %6, %10 : vector<16x128xi1>, vector<16x128xf32>
    %c0_6 = arith.constant 0 : index
    %c0_7 = arith.constant 0 : index
    %12 = vector.load %arg3[%c0_6, %c0_7] : memref<8x16xbf16, #tpu.memory_space<vmem>>, vector<8x16xbf16>
    %13 = arith.truncf %11 : vector<16x128xf32> to vector<16x128xbf16>
    %cst_8 = arith.constant dense<0.000000e+00> : vector<8x128xf32>
    %14 = tpu.matmul %12, %13, %cst_8 {dimension_numbers = #tpu.dot_dimension_numbers<[1], [0], [0], [1], [0, 0, 1, 1], [], []>} : vector<8x16xbf16>, vector<16x128xbf16>, vector<8x128xf32> -> vector<8x128xf32>
    %cst_9 = arith.constant 0.000000e+00 : f32
    %15 = vector.broadcast %cst_9 : f32 to vector<8x128xf32>
    %16 = arith.maximumf %14, %15 : vector<8x128xf32>
    %17 = arith.truncf %16 : vector<8x128xf32> to vector<8x128xbf16>
    %c0_10 = arith.constant 0 : index
    %c0_11 = arith.constant 0 : index
    %18 = vector.load %arg5[%c0_10, %c0_11] : memref<8x128xbf16, #tpu.memory_space<vmem>>, vector<8x128xbf16>
    tpu.vector_store %arg5[%c0_10, %c0_11], %17 {strides = array<i32>} : memref<8x128xbf16, #tpu.memory_space<vmem>>, vector<8x128xbf16>,
    return
  }
  func.func @transform_0(%arg0: i32) -> (i32, i32) {
    %c0_i32 = arith.constant 0 : i32
    %c0_i32_0 = arith.constant 0 : i32
    %c0_i32_1 = arith.constant 0 : i32
    return %c0_i32, %c0_i32_0 : i32, i32
  }
  func.func @transform_1(%arg0: i32) -> (i32, i32) {
    %c0_i32 = arith.constant 0 : i32
    %c0_i32_0 = arith.constant 0 : i32
    %c0_i32_1 = arith.constant 0 : i32
    return %c0_i32, %c0_i32_0 : i32, i32
  }
  func.func @transform_2(%arg0: i32) -> (i32, i32) {
    %c0_i32 = arith.constant 0 : i32
    %c0_i32_0 = arith.constant 0 : i32
    %c0_i32_1 = arith.constant 0 : i32
    return %c0_i32, %c0_i32_0 : i32, i32
  }
  func.func @transform_3(%arg0: i32) -> (i32, i32) {
    %c0_i32 = arith.constant 0 : i32
    %c0_i32_0 = arith.constant 0 : i32
    return %c0_i32, %arg0 : i32, i32
  }
  func.func @transform_4(%arg0: i32) -> (i32, i32) {
    %c0_i32 = arith.constant 0 : i32
    %c0_i32_0 = arith.constant 0 : i32
    return %c0_i32, %arg0 : i32, i32
  }
}

module attributes {stable_mosaic.version = 11 : i64} {
  func.func @_gemm_stats_kernel(%arg0: i32, %arg1: i32, %arg2: memref<64x256xbf16, #tpu.memory_space<vmem>>, %arg3: memref<256x128xbf16, #tpu.memory_space<vmem>>, %arg4: memref<64x128xf32, #tpu.memory_space<vmem>>, %arg5: memref<1x64x1xf32, #tpu.memory_space<vmem>>, %arg6: memref<1x64x1xf32, #tpu.memory_space<vmem>>, %arg7: memref<64x128xf32, #tpu.memory_space<vmem>>) attributes {dimension_semantics = [#tpu.dimension_semantics<parallel>, #tpu.dimension_semantics<arbitrary>], iteration_bounds = array<i64: 1, 1>, scalar_prefetch = 0 : i64, scratch_operands = 1 : i64, tpu.core_type = #tpu.core_type<tc>, window_params = [{transform_indices = @transform_0, window_bounds = array<i64: 64, 256>}, {transform_indices = @transform_1, window_bounds = array<i64: 256, 128>}, {transform_indices = @transform_2, window_bounds = array<i64: 64, 128>}, {transform_indices = @transform_3, window_bounds = array<i64: 1, 64, 1>}, {transform_indices = @transform_4, window_bounds = array<i64: 1, 64, 1>}]} {
    %c0_i32 = arith.constant 0 : i32
    %0 = arith.cmpi eq, %arg1, %c0_i32 : i32
    %1 = arith.extui %0 : i1 to i32
    %c0_i32_0 = arith.constant 0 : i32
    %2 = arith.cmpi ne, %1, %c0_i32_0 : i32
    scf.if %2 {
      %cst_10 = arith.constant 0.000000e+00 : f32
      %12 = vector.broadcast %cst_10 : f32 to vector<64x128xf32>
      %c0_11 = arith.constant 0 : index
      %c0_12 = arith.constant 0 : index
      %13 = vector.load %arg7[%c0_11, %c0_12] : memref<64x128xf32, #tpu.memory_space<vmem>>, vector<64x128xf32>
      tpu.vector_store %arg7[%c0_11, %c0_12], %12 {strides = array<i32>} : memref<64x128xf32, #tpu.memory_space<vmem>>, vector<64x128xf32>,
    } else {
    }
    %c0 = arith.constant 0 : index
    %c0_1 = arith.constant 0 : index
    %3 = vector.load %arg7[%c0, %c0_1] : memref<64x128xf32, #tpu.memory_space<vmem>>, vector<64x128xf32>
    %c0_2 = arith.constant 0 : index
    %c0_3 = arith.constant 0 : index
    %4 = vector.load %arg2[%c0_2, %c0_3] : memref<64x256xbf16, #tpu.memory_space<vmem>>, vector<64x256xbf16>
    %c0_4 = arith.constant 0 : index
    %c0_5 = arith.constant 0 : index
    %5 = vector.load %arg3[%c0_4, %c0_5] : memref<256x128xbf16, #tpu.memory_space<vmem>>, vector<256x128xbf16>
    %cst = arith.constant dense<0.000000e+00> : vector<64x128xf32>
    %6 = tpu.matmul %4, %5, %cst {dimension_numbers = #tpu.dot_dimension_numbers<[1], [0], [0], [1], [0, 0, 1, 1], [], []>} : vector<64x256xbf16>, vector<256x128xbf16>, vector<64x128xf32> -> vector<64x128xf32>
    %7 = arith.addf %3, %6 : vector<64x128xf32>
    %c0_6 = arith.constant 0 : index
    %c0_7 = arith.constant 0 : index
    %8 = vector.load %arg7[%c0_6, %c0_7] : memref<64x128xf32, #tpu.memory_space<vmem>>, vector<64x128xf32>
    tpu.vector_store %arg7[%c0_6, %c0_7], %7 {strides = array<i32>} : memref<64x128xf32, #tpu.memory_space<vmem>>, vector<64x128xf32>,
    %c0_i32_8 = arith.constant 0 : i32
    %9 = arith.cmpi eq, %arg1, %c0_i32_8 : i32
    %10 = arith.extui %9 : i1 to i32
    %c0_i32_9 = arith.constant 0 : i32
    %11 = arith.cmpi ne, %10, %c0_i32_9 : i32
    scf.if %11 {
      %c0_10 = arith.constant 0 : index
      %c0_11 = arith.constant 0 : index
      %12 = vector.load %arg7[%c0_10, %c0_11] : memref<64x128xf32, #tpu.memory_space<vmem>>, vector<64x128xf32>
      %c0_12 = arith.constant 0 : index
      %c0_13 = arith.constant 0 : index
      %13 = vector.load %arg4[%c0_12, %c0_13] : memref<64x128xf32, #tpu.memory_space<vmem>>, vector<64x128xf32>
      tpu.vector_store %arg4[%c0_12, %c0_13], %12 {strides = array<i32>} : memref<64x128xf32, #tpu.memory_space<vmem>>, vector<64x128xf32>,
      %cst_14 = arith.constant dense<0.000000e+00> : vector<64xf32>
      %14 = vector.multi_reduction <add>, %12, %cst_14 [1] : vector<64x128xf32> to vector<64xf32>
      %15 = vector.shape_cast %14 : vector<64xf32> to vector<64x1xf32>
      %16 = vector.shape_cast %15 : vector<64x1xf32> to vector<1x64x1xf32>
      %c0_15 = arith.constant 0 : index
      %c0_16 = arith.constant 0 : index
      %c0_17 = arith.constant 0 : index
      %17 = vector.load %arg5[%c0_15, %c0_16, %c0_17] : memref<1x64x1xf32, #tpu.memory_space<vmem>>, vector<1x64x1xf32>
      tpu.vector_store %arg5[%c0_15, %c0_16, %c0_17], %16 {strides = array<i32>} : memref<1x64x1xf32, #tpu.memory_space<vmem>>, vector<1x64x1xf32>,
      %18 = arith.mulf %12, %12 : vector<64x128xf32>
      %cst_18 = arith.constant dense<0.000000e+00> : vector<64xf32>
      %19 = vector.multi_reduction <add>, %18, %cst_18 [1] : vector<64x128xf32> to vector<64xf32>
      %20 = vector.shape_cast %19 : vector<64xf32> to vector<64x1xf32>
      %21 = vector.shape_cast %20 : vector<64x1xf32> to vector<1x64x1xf32>
      %c0_19 = arith.constant 0 : index
      %c0_20 = arith.constant 0 : index
      %c0_21 = arith.constant 0 : index
      %22 = vector.load %arg6[%c0_19, %c0_20, %c0_21] : memref<1x64x1xf32, #tpu.memory_space<vmem>>, vector<1x64x1xf32>
      tpu.vector_store %arg6[%c0_19, %c0_20, %c0_21], %21 {strides = array<i32>} : memref<1x64x1xf32, #tpu.memory_space<vmem>>, vector<1x64x1xf32>,
    } else {
    }
    return
  }
  func.func @transform_0(%arg0: i32, %arg1: i32) -> (i32, i32) {
    %c0_i32 = arith.constant 0 : i32
    %c0_i32_0 = arith.constant 0 : i32
    return %c0_i32, %arg1 : i32, i32
  }
  func.func @transform_1(%arg0: i32, %arg1: i32) -> (i32, i32) {
    %c0_i32 = arith.constant 0 : i32
    return %arg1, %arg0 : i32, i32
  }
  func.func @transform_2(%arg0: i32, %arg1: i32) -> (i32, i32) {
    %c0_i32 = arith.constant 0 : i32
    %c0_i32_0 = arith.constant 0 : i32
    return %c0_i32, %arg0 : i32, i32
  }
  func.func @transform_3(%arg0: i32, %arg1: i32) -> (i32, i32, i32) {
    %c0_i32 = arith.constant 0 : i32
    %c0_i32_0 = arith.constant 0 : i32
    %c0_i32_1 = arith.constant 0 : i32
    return %arg0, %c0_i32, %c0_i32_0 : i32, i32, i32
  }
  func.func @transform_4(%arg0: i32, %arg1: i32) -> (i32, i32, i32) {
    %c0_i32 = arith.constant 0 : i32
    %c0_i32_0 = arith.constant 0 : i32
    %c0_i32_1 = arith.constant 0 : i32
    return %arg0, %c0_i32, %c0_i32_0 : i32, i32, i32
  }
}

module attributes {stable_mosaic.version = 11 : i64} {
  func.func @_up_finish_kernel(%arg0: i32, %arg1: memref<64x1xf32, #tpu.memory_space<vmem>>, %arg2: memref<64x1xf32, #tpu.memory_space<vmem>>, %arg3: memref<32x64xbf16, #tpu.memory_space<vmem>>, %arg4: memref<64x128xf32, #tpu.memory_space<vmem>>, %arg5: memref<32x128xf32, #tpu.memory_space<vmem>>, %arg6: memref<1x32x1xf32, #tpu.memory_space<vmem>>, %arg7: memref<1x32x1xf32, #tpu.memory_space<vmem>>) attributes {dimension_semantics = [#tpu.dimension_semantics<parallel>], iteration_bounds = array<i64: 1>, scalar_prefetch = 0 : i64, scratch_operands = 0 : i64, tpu.core_type = #tpu.core_type<tc>, window_params = [{pipeline_mode = #tpu.pipeline_mode<synchronous>, transform_indices = @transform_0, window_bounds = array<i64: 64, 1>}, {pipeline_mode = #tpu.pipeline_mode<synchronous>, transform_indices = @transform_1, window_bounds = array<i64: 64, 1>}, {pipeline_mode = #tpu.pipeline_mode<synchronous>, transform_indices = @transform_2, window_bounds = array<i64: 32, 64>}, {transform_indices = @transform_3, window_bounds = array<i64: 64, 128>}, {transform_indices = @transform_4, window_bounds = array<i64: 32, 128>}, {transform_indices = @transform_5, window_bounds = array<i64: 1, 32, 1>}, {transform_indices = @transform_6, window_bounds = array<i64: 1, 32, 1>}]} {
    %c0 = arith.constant 0 : index
    %c0_0 = arith.constant 0 : index
    %0 = vector.load %arg4[%c0, %c0_0] : memref<64x128xf32, #tpu.memory_space<vmem>>, vector<64x128xf32>
    %c0_1 = arith.constant 0 : index
    %c0_2 = arith.constant 0 : index
    %1 = vector.load %arg1[%c0_1, %c0_2] : memref<64x1xf32, #tpu.memory_space<vmem>>, vector<64x1xf32>
    %2 = vector.broadcast %1 : vector<64x1xf32> to vector<64x128xf32>
    %3 = arith.mulf %0, %2 : vector<64x128xf32>
    %c0_3 = arith.constant 0 : index
    %c0_4 = arith.constant 0 : index
    %4 = vector.load %arg2[%c0_3, %c0_4] : memref<64x1xf32, #tpu.memory_space<vmem>>, vector<64x1xf32>
    %5 = vector.broadcast %4 : vector<64x1xf32> to vector<64x128xf32>
    %6 = arith.addf %3, %5 : vector<64x128xf32>
    %cst = arith.constant 0.000000e+00 : f32
    %7 = vector.broadcast %cst : f32 to vector<64x128xf32>
    %8 = arith.maximumf %6, %7 : vector<64x128xf32>
    %c0_5 = arith.constant 0 : index
    %c0_6 = arith.constant 0 : index
    %9 = vector.load %arg3[%c0_5, %c0_6] : memref<32x64xbf16, #tpu.memory_space<vmem>>, vector<32x64xbf16>
    %10 = arith.truncf %8 : vector<64x128xf32> to vector<64x128xbf16>
    %cst_7 = arith.constant dense<0.000000e+00> : vector<32x128xf32>
    %11 = tpu.matmul %9, %10, %cst_7 {dimension_numbers = #tpu.dot_dimension_numbers<[1], [0], [0], [1], [0, 0, 1, 1], [], []>} : vector<32x64xbf16>, vector<64x128xbf16>, vector<32x128xf32> -> vector<32x128xf32>
    %c0_8 = arith.constant 0 : index
    %c0_9 = arith.constant 0 : index
    %12 = vector.load %arg5[%c0_8, %c0_9] : memref<32x128xf32, #tpu.memory_space<vmem>>, vector<32x128xf32>
    tpu.vector_store %arg5[%c0_8, %c0_9], %11 {strides = array<i32>} : memref<32x128xf32, #tpu.memory_space<vmem>>, vector<32x128xf32>,
    %cst_10 = arith.constant dense<0.000000e+00> : vector<32xf32>
    %13 = vector.multi_reduction <add>, %11, %cst_10 [1] : vector<32x128xf32> to vector<32xf32>
    %14 = vector.shape_cast %13 : vector<32xf32> to vector<32x1xf32>
    %15 = vector.shape_cast %14 : vector<32x1xf32> to vector<1x32x1xf32>
    %c0_11 = arith.constant 0 : index
    %c0_12 = arith.constant 0 : index
    %c0_13 = arith.constant 0 : index
    %16 = vector.load %arg6[%c0_11, %c0_12, %c0_13] : memref<1x32x1xf32, #tpu.memory_space<vmem>>, vector<1x32x1xf32>
    tpu.vector_store %arg6[%c0_11, %c0_12, %c0_13], %15 {strides = array<i32>} : memref<1x32x1xf32, #tpu.memory_space<vmem>>, vector<1x32x1xf32>,
    %17 = arith.mulf %11, %11 : vector<32x128xf32>
    %cst_14 = arith.constant dense<0.000000e+00> : vector<32xf32>
    %18 = vector.multi_reduction <add>, %17, %cst_14 [1] : vector<32x128xf32> to vector<32xf32>
    %19 = vector.shape_cast %18 : vector<32xf32> to vector<32x1xf32>
    %20 = vector.shape_cast %19 : vector<32x1xf32> to vector<1x32x1xf32>
    %c0_15 = arith.constant 0 : index
    %c0_16 = arith.constant 0 : index
    %c0_17 = arith.constant 0 : index
    %21 = vector.load %arg7[%c0_15, %c0_16, %c0_17] : memref<1x32x1xf32, #tpu.memory_space<vmem>>, vector<1x32x1xf32>
    tpu.vector_store %arg7[%c0_15, %c0_16, %c0_17], %20 {strides = array<i32>} : memref<1x32x1xf32, #tpu.memory_space<vmem>>, vector<1x32x1xf32>,
    return
  }
  func.func @transform_0(%arg0: i32) -> (i32, i32) {
    %c0_i32 = arith.constant 0 : i32
    %c0_i32_0 = arith.constant 0 : i32
    %c0_i32_1 = arith.constant 0 : i32
    return %c0_i32, %c0_i32_0 : i32, i32
  }
  func.func @transform_1(%arg0: i32) -> (i32, i32) {
    %c0_i32 = arith.constant 0 : i32
    %c0_i32_0 = arith.constant 0 : i32
    %c0_i32_1 = arith.constant 0 : i32
    return %c0_i32, %c0_i32_0 : i32, i32
  }
  func.func @transform_2(%arg0: i32) -> (i32, i32) {
    %c0_i32 = arith.constant 0 : i32
    %c0_i32_0 = arith.constant 0 : i32
    %c0_i32_1 = arith.constant 0 : i32
    return %c0_i32, %c0_i32_0 : i32, i32
  }
  func.func @transform_3(%arg0: i32) -> (i32, i32) {
    %c0_i32 = arith.constant 0 : i32
    %c0_i32_0 = arith.constant 0 : i32
    return %c0_i32, %arg0 : i32, i32
  }
  func.func @transform_4(%arg0: i32) -> (i32, i32) {
    %c0_i32 = arith.constant 0 : i32
    %c0_i32_0 = arith.constant 0 : i32
    return %c0_i32, %arg0 : i32, i32
  }
  func.func @transform_5(%arg0: i32) -> (i32, i32, i32) {
    %c0_i32 = arith.constant 0 : i32
    %c0_i32_0 = arith.constant 0 : i32
    %c0_i32_1 = arith.constant 0 : i32
    return %arg0, %c0_i32, %c0_i32_0 : i32, i32, i32
  }
  func.func @transform_6(%arg0: i32) -> (i32, i32, i32) {
    %c0_i32 = arith.constant 0 : i32
    %c0_i32_0 = arith.constant 0 : i32
    %c0_i32_1 = arith.constant 0 : i32
    return %arg0, %c0_i32, %c0_i32_0 : i32, i32, i32
  }
}

module attributes {stable_mosaic.version = 11 : i64} {
  func.func @_scale_shift_kernel(%arg0: i32, %arg1: memref<32x1xf32, #tpu.memory_space<vmem>>, %arg2: memref<32x1xf32, #tpu.memory_space<vmem>>, %arg3: memref<32x128xf32, #tpu.memory_space<vmem>>, %arg4: memref<32x128xf32, #tpu.memory_space<vmem>>) attributes {dimension_semantics = [#tpu.dimension_semantics<parallel>], iteration_bounds = array<i64: 1>, scalar_prefetch = 0 : i64, scratch_operands = 0 : i64, tpu.core_type = #tpu.core_type<tc>, window_params = [{pipeline_mode = #tpu.pipeline_mode<synchronous>, transform_indices = @transform_0, window_bounds = array<i64: 32, 1>}, {pipeline_mode = #tpu.pipeline_mode<synchronous>, transform_indices = @transform_1, window_bounds = array<i64: 32, 1>}, {transform_indices = @transform_2, window_bounds = array<i64: 32, 128>}, {transform_indices = @transform_3, window_bounds = array<i64: 32, 128>}]} {
    %c0 = arith.constant 0 : index
    %c0_0 = arith.constant 0 : index
    %0 = vector.load %arg3[%c0, %c0_0] : memref<32x128xf32, #tpu.memory_space<vmem>>, vector<32x128xf32>
    %c0_1 = arith.constant 0 : index
    %c0_2 = arith.constant 0 : index
    %1 = vector.load %arg1[%c0_1, %c0_2] : memref<32x1xf32, #tpu.memory_space<vmem>>, vector<32x1xf32>
    %2 = vector.broadcast %1 : vector<32x1xf32> to vector<32x128xf32>
    %3 = arith.mulf %0, %2 : vector<32x128xf32>
    %c0_3 = arith.constant 0 : index
    %c0_4 = arith.constant 0 : index
    %4 = vector.load %arg2[%c0_3, %c0_4] : memref<32x1xf32, #tpu.memory_space<vmem>>, vector<32x1xf32>
    %5 = vector.broadcast %4 : vector<32x1xf32> to vector<32x128xf32>
    %6 = arith.addf %3, %5 : vector<32x128xf32>
    %c0_5 = arith.constant 0 : index
    %c0_6 = arith.constant 0 : index
    %7 = vector.load %arg4[%c0_5, %c0_6] : memref<32x128xf32, #tpu.memory_space<vmem>>, vector<32x128xf32>
    tpu.vector_store %arg4[%c0_5, %c0_6], %6 {strides = array<i32>} : memref<32x128xf32, #tpu.memory_space<vmem>>, vector<32x128xf32>,
    return
  }
  func.func @transform_0(%arg0: i32) -> (i32, i32) {
    %c0_i32 = arith.constant 0 : i32
    %c0_i32_0 = arith.constant 0 : i32
    %c0_i32_1 = arith.constant 0 : i32
    return %c0_i32, %c0_i32_0 : i32, i32
  }
  func.func @transform_1(%arg0: i32) -> (i32, i32) {
    %c0_i32 = arith.constant 0 : i32
    %c0_i32_0 = arith.constant 0 : i32
    %c0_i32_1 = arith.constant 0 : i32
    return %c0_i32, %c0_i32_0 : i32, i32
  }
  func.func @transform_2(%arg0: i32) -> (i32, i32) {
    %c0_i32 = arith.constant 0 : i32
    %c0_i32_0 = arith.constant 0 : i32
    return %c0_i32, %arg0 : i32, i32
  }
  func.func @transform_3(%arg0: i32) -> (i32, i32) {
    %c0_i32 = arith.constant 0 : i32
    %c0_i32_0 = arith.constant 0 : i32
    return %c0_i32, %arg0 : i32, i32
  }
}

</mosaic_0001>

<bundles_post_ra>
// kernel: _lambda_.6
= control target key start
LH: loop header
LB: loop body
LE: loop exit
PB: predicated region body
PF: predicated region fallthrough
CT: control target
= control target key end

     0   :  { %v121_v0 = vmov 0   ;;  %v122_v5 = vmov 0.0   ;;  %vm123_vm0 = vmmov 0   ;;  %vm56_vm3 = vcmask 130048   ;;  %s173_s1 = inlined_call_operand.vmem [shape: f32[16,1], index: 1, kind: input, shape index: {}]   ;;  %s174_s0 = inlined_call_operand.vmem [shape: f32[16,1], index: 0, kind: input, shape index: {}]   ;;  %s175_s3 = inlined_call_operand.vmem [shape: f32[16,128], index: 3, kind: input, shape index: {}]   ;;  %s176_s2 = inlined_call_operand.vmem [shape: bf16[8,16], index: 2, kind: input, shape index: {}]   ;;  %s177_s4 = inlined_call_operand.vmem [shape: bf16[8,128], index: 4, kind: output, shape index: {}]  }
   0x1   :  { %120 = vset.pattern.permute.xlu1 %v121_v0  ;;  %119 = vset.pattern.permute.xlu0 %v121_v0  ;;  %v34_v1 = vld [vmem:[%s173_s1] sm:$0xff]  ;;  %v35_v3 = vld [vmem:[%s173_s1 + $0x8] sm:$0xff] }
   0x2   :  { %v20_v2 = vld [vmem:[%s174_s0] sm:$0xff]  ;;  %38 = vperm.xlu1 %120, %v34_v1   ;;  %v21_v4 = vld [vmem:[%s174_s0 + $0x8] sm:$0xff]  ;;  %110 = vmatprep.subr.bf16.mxu0 %v122_v5 }
   0x3   :  { %24 = vperm.xlu0 %119, %v20_v2   ;;  %112 = vmatprep.mubr.msk.bf16.mxu0 %vm123_vm0, %v122_v5  ;;  %v18_v6 = vld [vmem:[%s175_s3] sm:$0xff]  ;;  %v19_v10 = vld [vmem:[%s175_s3 + $0x8] sm:$0xff] }
   0x4   :  { %v54_v21 = vld [vmem:[%s176_s2] sm:$0xf] }
   0x6   :  { %43 = vperm.xlu1 %120, %v35_v3  }
   0x7   :  { %29 = vperm.xlu0 %119, %v21_v4  }
  0x81   :  { %v39_v7 = vpop.permute.xlu1 %38 }
  0x82   :  { %v25_v8 = vpop.permute.xlu0 %24 }
  0x83   :  { %v32_v9 = vmul.f32 %v25_v8, %v18_v6 }
  0x85   :  { %v46_v11 = vadd.f32 %v39_v7, %v32_v9  ;;  %v44_v14 = vpop.permute.xlu1 %43 }
  0x86   :  { %v30_v12 = vpop.permute.xlu0 %29 }
  0x87   :  { %v33_v13 = vmul.f32 %v30_v12, %v19_v10  ;;  %v50_v16 = vmul.f32 0.2, %v46_v11  ;;  %vm48_vm1 = vcmp.ge.f32.partialorder %v46_v11, 0.0 }
  0x89   :  { %v47_v15 = vadd.f32 %v44_v14, %v33_v13  ;;  %v52_v18 = vsel %vm48_vm1, %v46_v11, %v50_v16 }
  0x8b   :  { %vm49_vm2 = vcmp.ge.f32.partialorder %v47_v15, 0.0  ;;  %v51_v17 = vmul.f32 0.2, %v47_v15 }
  0x8d   :  { %v53_v19 = vsel %vm49_vm2, %v47_v15, %v51_v17 }
  0x8e   :  { %v55_v20 = vpack.c.bf16 %v53_v19, %v52_v18 }
  0x90   :  { %111 = vmatpush3.bf16.msra.mxu0 %v55_v20 }
  0x93   :  { %113 = vmatmul.mubr.msk.bf16.vlgmr.msra.gmra.mrb[0].mxu0 %vm56_vm3, %v54_v21 }
 0x166   :  { %v94_v22 = vpop.f32.mrb[0].mxu0 }
 0x167   :  { %v100_v23 = vmax.f32 %v94_v22, 0.0  ;;  %v114_v24 = vpop.f32.mrb[1].mxu0 }
 0x168   :  { %v97_v25 = vpop.f32.mrb[2].mxu0 }
 0x169   :  { %v101_v26 = vpack.c.bf16 %v100_v23, %v100_v23  ;;  %v115_v27 = vpop.f32.mrb[3].mxu0 }
 0x16b   :  { %102 = vst [vmem:[%s177_s4] sm:$0xf] %v101_v26 }

// kernel: _lambda_.5
= control target key start
LH: loop header
LB: loop body
LE: loop exit
PB: predicated region body
PF: predicated region fallthrough
CT: control target
= control target key end

     0   :  { %v943_v36 = vmov 0.0   ;;  %vm944_vm0 = vmmov 0   ;;  %vm694_vm1 = vcmask 7168   ;;  %s1177_s1 = inlined_call_operand.vmem [shape: bf16[896,128], index: 1, kind: input, shape index: {}]   ;;  %s1178_s0 = inlined_call_operand.vmem [shape: bf16[16,896], index: 0, kind: input, shape index: {}]   ;;  %s1179_s2 = inlined_call_operand.vmem [shape: f32[16,128], index: 2, kind: output, shape index: {0}]   ;;  %s1180_s3 = inlined_call_operand.vmem [shape: f32[1,16,1], index: 3, kind: output, shape index: {1}]   ;;  %s1181_s4 = inlined_call_operand.vmem [shape: f32[1,16,1], index: 4, kind: output, shape index: {2}]  }
   0x1   :  { %v877_v0 = vld [vmem:[%s1177_s1 + $0x40] sm:$0xff]   ;;  %v881_v4 = vld [vmem:[%s1177_s1 + $0x48] sm:$0xff]   ;;  %v885_v8 = vld [vmem:[%s1177_s1 + $0x50] sm:$0xff]  }
   0x2   :  { %v878_v1 = vld [vmem:[%s1177_s1 + $0xc0] sm:$0xff]   ;;  %780 = vmatprep.subr.bf16.mxu0 %v877_v0  ;;  %v882_v5 = vld [vmem:[%s1177_s1 + $0xc8] sm:$0xff]   ;;  %v886_v9 = vld [vmem:[%s1177_s1 + $0xd0] sm:$0xff]  }
   0x3   :  { %v879_v2 = vld [vmem:[%s1177_s1] sm:$0xff]   ;;  %802 = vmatprep.subr.bf16.mxu1 %v878_v1  ;;  %v883_v6 = vld [vmem:[%s1177_s1 + $0x8] sm:$0xff]   ;;  %v887_v10 = vld [vmem:[%s1177_s1 + $0x10] sm:$0xff]  }
   0x4   :  { %v880_v3 = vld [vmem:[%s1177_s1 + $0x80] sm:$0xff]   ;;  %781 = vmatpush3.bf16.msra.mxu0 %v879_v2  ;;  %v884_v7 = vld [vmem:[%s1177_s1 + $0x88] sm:$0xff]   ;;  %v888_v11 = vld [vmem:[%s1177_s1 + $0x90] sm:$0xff]  }
   0x5   :  { %803 = vmatpush3.bf16.msra.mxu1 %v880_v3  ;;  %782 = vmatprep.subr.bf16.mxu0 %v881_v4  ;;  %v889_v12 = vld [vmem:[%s1177_s1 + $0x58] sm:$0xff]   ;;  %v893_v16 = vld [vmem:[%s1177_s1 + $0x60] sm:$0xff]   ;;  %v897_v20 = vld [vmem:[%s1177_s1 + $0x68] sm:$0xff]  }
   0x6   :  { %804 = vmatprep.subr.bf16.mxu1 %v882_v5  ;;  %v890_v13 = vld [vmem:[%s1177_s1 + $0xd8] sm:$0xff]   ;;  %v894_v17 = vld [vmem:[%s1177_s1 + $0xe0] sm:$0xff]   ;;  %v898_v21 = vld [vmem:[%s1177_s1 + $0xe8] sm:$0xff]  }
   0x7   :  { %v891_v14 = vld [vmem:[%s1177_s1 + $0x18] sm:$0xff]   ;;  %v895_v18 = vld [vmem:[%s1177_s1 + $0x20] sm:$0xff]   ;;  %v899_v22 = vld [vmem:[%s1177_s1 + $0x28] sm:$0xff]  }
   0x8   :  { %783 = vmatpush3.bf16.msra.mxu0 %v883_v6  ;;  %v892_v15 = vld [vmem:[%s1177_s1 + $0x98] sm:$0xff]   ;;  %v896_v19 = vld [vmem:[%s1177_s1 + $0xa0] sm:$0xff]   ;;  %v900_v23 = vld [vmem:[%s1177_s1 + $0xa8] sm:$0xff]  }
   0x9   :  { %805 = vmatpush3.bf16.msra.mxu1 %v884_v7  ;;  %784 = vmatprep.subr.bf16.mxu0 %v885_v8  ;;  %v901_v24 = vld [vmem:[%s1177_s1 + $0x70] sm:$0xff]   ;;  %v905_v28 = vld [vmem:[%s1177_s1 + $0x78] sm:$0xff]   ;;  %v911_v33 = vld [vmem:[%s1178_s0 + $0x4] ss:$28 sps:$4 sm:$0xff]  }
   0xa   :  { %806 = vmatprep.subr.bf16.mxu1 %v886_v9  ;;  %v902_v25 = vld [vmem:[%s1177_s1 + $0xf0] sm:$0xff]   ;;  %v906_v29 = vld [vmem:[%s1177_s1 + $0xf8] sm:$0xff]   ;;  %v912_v34 = vld [vmem:[%s1178_s0 + $0x8] ss:$28 sps:$4 sm:$0xff]   ;;  %547 = vmatprep.mubr.bf16.mxu0 %v911_v33 }
   0xb   :  { %v903_v26 = vld [vmem:[%s1177_s1 + $0x30] sm:$0xff]   ;;  %v907_v30 = vld [vmem:[%s1177_s1 + $0x38] sm:$0xff]   ;;  %v914_v35 = vld [vmem:[%s1178_s0 + $0xc] ss:$28 sps:$4 sm:$0xff]  }
   0xc   :  { %785 = vmatpush3.bf16.msra.mxu0 %v887_v10  ;;  %v904_v27 = vld [vmem:[%s1177_s1 + $0xb0] sm:$0xff]   ;;  %v908_v31 = vld [vmem:[%s1177_s1 + $0xb8] sm:$0xff]   ;;  %v915_v37 = vld [vmem:[%s1177_s1 + $0x140] sm:$0xff]   ;;  %588 = vmatprep.mubr.bf16.mxu1 %v914_v35 }
   0xd   :  { %807 = vmatpush3.bf16.msra.mxu1 %v888_v11  ;;  %786 = vmatprep.subr.bf16.mxu0 %v889_v12  ;;  %v909_v32 = vld [vmem:[%s1178_s0] ss:$28 sps:$4 sm:$0xff]   ;;  %v918_v40 = vld [vmem:[%s1177_s1 + $0x148] sm:$0xff]   ;;  %v921_v43 = vld [vmem:[%s1177_s1 + $0x150] sm:$0xff]  }
   0xe   :  { %808 = vmatprep.subr.bf16.mxu1 %v890_v13  ;;  %v916_v38 = vld [vmem:[%s1177_s1 + $0x100] sm:$0xff]   ;;  %v919_v41 = vld [vmem:[%s1177_s1 + $0x108] sm:$0xff]   ;;  %v922_v44 = vld [vmem:[%s1177_s1 + $0x110] sm:$0xff]  }
   0xf   :  { %v917_v39 = vld [vmem:[%s1177_s1 + $0x180] sm:$0xff]   ;;  %v920_v42 = vld [vmem:[%s1177_s1 + $0x188] sm:$0xff]   ;;  %v923_v45 = vld [vmem:[%s1177_s1 + $0x190] sm:$0xff]  }
  0x10   :  { %787 = vmatpush3.bf16.msra.mxu0 %v891_v14  ;;  %v924_v46 = vld [vmem:[%s1177_s1 + $0x158] sm:$0xff]   ;;  %v927_v49 = vld [vmem:[%s1177_s1 + $0x160] sm:$0xff]   ;;  %v930_v52 = vld [vmem:[%s1177_s1 + $0x168] sm:$0xff]  }
  0x11   :  { %809 = vmatpush3.bf16.msra.mxu1 %v892_v15  ;;  %788 = vmatprep.subr.bf16.mxu0 %v893_v16  ;;  %v925_v47 = vld [vmem:[%s1177_s1 + $0x118] sm:$0xff]   ;;  %v928_v50 = vld [vmem:[%s1177_s1 + $0x120] sm:$0xff]   ;;  %v931_v53 = vld [vmem:[%s1177_s1 + $0x128] sm:$0xff]  }
  0x12   :  { %810 = vmatprep.subr.bf16.mxu1 %v894_v17  ;;  %v926_v48 = vld [vmem:[%s1177_s1 + $0x198] sm:$0xff]   ;;  %v929_v51 = vld [vmem:[%s1177_s1 + $0x1a0] sm:$0xff]   ;;  %v932_v54 = vld [vmem:[%s1177_s1 + $0x1a8] sm:$0xff]  }
  0x13   :  { %v933_v55 = vld [vmem:[%s1177_s1 + $0x170] sm:$0xff]   ;;  %v936_v59 = vld [vmem:[%s1177_s1 + $0x178] sm:$0xff]  }
  0x14   :  { %789 = vmatpush3.bf16.msra.mxu0 %v895_v18  ;;  %v934_v56 = vld [vmem:[%s1177_s1 + $0x130] sm:$0xff]   ;;  %v937_v60 = vld [vmem:[%s1177_s1 + $0x138] sm:$0xff]  }
  0x15   :  { %811 = vmatpush3.bf16.msra.mxu1 %v896_v19  ;;  %790 = vmatprep.subr.bf16.mxu0 %v897_v20  ;;  %v935_v57 = vld [vmem:[%s1177_s1 + $0x1b0] sm:$0xff]   ;;  %v941_v61 = vld [vmem:[%s1177_s1 + $0x1b8] sm:$0xff]  }
  0x16   :  { %812 = vmatprep.subr.bf16.mxu1 %v898_v21  ;;  %v940_v58 = vld [vmem:[%s1178_s0 + $0x14] ss:$28 sps:$4 sm:$0xff]  }
  0x17   :  { %v938_v62 = vld [vmem:[%s1178_s0 + $0x10] ss:$28 sps:$4 sm:$0xff]   ;;  %v942_v63 = vld [vmem:[%s1178_s0 + $0x18] ss:$28 sps:$4 sm:$0xff]  }
  0x18   :  { %791 = vmatpush3.bf16.msra.mxu0 %v899_v22 }
  0x19   :  { %813 = vmatpush3.bf16.msra.mxu1 %v900_v23  ;;  %792 = vmatprep.subr.bf16.mxu0 %v901_v24 }
  0x1a   :  { %814 = vmatprep.subr.bf16.mxu1 %v902_v25 }
  0x1c   :  { %793 = vmatpush3.bf16.msra.mxu0 %v903_v26 }
  0x1d   :  { %815 = vmatpush3.bf16.msra.mxu1 %v904_v27  ;;  %794 = vmatprep.subr.bf16.mxu0 %v905_v28 }
  0x1e   :  { %816 = vmatprep.subr.bf16.mxu1 %v906_v29 }
  0x20   :  { %795 = vmatpush3.bf16.msra.mxu0 %v907_v30 }
  0x21   :  { %817 = vmatpush3.bf16.msra.mxu1 %v908_v31  ;;  %824 = vmatprep.subr.bf16.mxu0 %v915_v37 }
  0x22   :  { %855 = vmatprep.subr.bf16.mxu1 %v943_v36 }
  0x23   :  { %548 = vmatmul.mubr.bf16.vlgmr.msra.gmra.mrb[0].mxu0 %v909_v32 }
  0x24   :  { %589 = vmatmul.mubr.bf16.vlgmr.msra.gmra.mrb[0].mxu1 %v912_v34  ;;  %825 = vmatpush3.bf16.msra.mxu0 %v916_v38 }
  0x25   :  { %871 = vmatprep.mubr.msk.bf16.mxu1 %vm944_vm0, %v943_v36  ;;  %856 = vmatpush3.bf16.msra.mxu1 %v917_v39 }
  0x26   :  { %826 = vmatprep.subr.bf16.mxu0 %v918_v40  ;;  %857 = vmatprep.subr.bf16.mxu1 %v943_v36 }
  0x27   :  { %629 = vmatprep.mubr.bf16.mxu0 %v940_v58 }
  0x28   :  { %827 = vmatpush3.bf16.msra.mxu0 %v919_v41 }
  0x29   :  { %858 = vmatpush3.bf16.msra.mxu1 %v920_v42  ;;  %828 = vmatprep.subr.bf16.mxu0 %v921_v43 }
  0x2a   :  { %859 = vmatprep.subr.bf16.mxu1 %v943_v36 }
  0x2c   :  { %829 = vmatpush3.bf16.msra.mxu0 %v922_v44 }
  0x2d   :  { %860 = vmatpush3.bf16.msra.mxu1 %v923_v45  ;;  %830 = vmatprep.subr.bf16.mxu0 %v924_v46 }
  0x2e   :  { %861 = vmatprep.subr.bf16.mxu1 %v943_v36 }
  0x30   :  { %831 = vmatpush3.bf16.msra.mxu0 %v925_v47 }
  0x31   :  { %862 = vmatpush3.bf16.msra.mxu1 %v926_v48  ;;  %832 = vmatprep.subr.bf16.mxu0 %v927_v49 }
  0x32   :  { %863 = vmatprep.subr.bf16.mxu1 %v943_v36 }
  0x34   :  { %833 = vmatpush3.bf16.msra.mxu0 %v928_v50 }
  0x35   :  { %864 = vmatpush3.bf16.msra.mxu1 %v929_v51  ;;  %834 = vmatprep.subr.bf16.mxu0 %v930_v52 }
  0x36   :  { %865 = vmatprep.subr.bf16.mxu1 %v943_v36 }
  0x38   :  { %835 = vmatpush3.bf16.msra.mxu0 %v931_v53 }
  0x39   :  { %866 = vmatpush3.bf16.msra.mxu1 %v932_v54  ;;  %836 = vmatprep.subr.bf16.mxu0 %v933_v55 }
  0x3a   :  { %867 = vmatprep.subr.bf16.mxu1 %v943_v36 }
  0x3c   :  { %837 = vmatpush3.bf16.msra.mxu0 %v934_v56 }
  0x3d   :  { %868 = vmatpush3.bf16.msra.mxu1 %v935_v57  ;;  %838 = vmatprep.subr.bf16.mxu0 %v936_v59 }
  0x3e   :  { %869 = vmatprep.subr.bf16.mxu1 %v943_v36 }
  0x40   :  { %839 = vmatpush3.bf16.msra.mxu0 %v937_v60 }
  0x41   :  { %870 = vmatpush3.bf16.msra.mxu1 %v941_v61 }
  0x43   :  { %630 = vmatmul.mubr.bf16.vlgmr.msra.gmra.mrb[4].mxu0 %v938_v62 }
  0x44   :  { %872 = vmatmul.mubr.bf16.vlgmr.msra.gmra.mrb[4].mxu1 %v942_v63 }
  0xf6   :  { %v796_v0 = vpop.f32.mrb[0].mxu0 }
  0xf7   :  { %v818_v1 = vpop.f32.mrb[0].mxu1  ;;  %v797_v2 = vpop.f32.mrb[1].mxu0 }
  0xf8   :  { %v798_v3 = vadd.f32 %v797_v2, %v796_v0  ;;  %v819_v4 = vpop.f32.mrb[1].mxu1  ;;  %v799_v5 = vpop.f32.mrb[2].mxu0 }
  0xf9   :  { %v820_v6 = vadd.f32 %v819_v4, %v818_v1  ;;  %v821_v7 = vpop.f32.mrb[2].mxu1  ;;  %v800_v8 = vpop.f32.mrb[3].mxu0 }
  0xfa   :  { %v801_v9 = vadd.f32 %v800_v8, %v799_v5  ;;  %v822_v10 = vpop.f32.mrb[3].mxu1 }
  0xfb   :  { %v591_v11 = vadd.f32 %v820_v6, %v798_v3  ;;  %v823_v12 = vadd.f32 %v822_v10, %v821_v7 }
  0xfd   :  { %v594_v13 = vadd.f32 %v823_v12, %v801_v9 }
 0x116   :  { %v840_v14 = vpop.f32.mrb[4].mxu0 }
 0x117   :  { %v841_v15 = vpop.f32.mrb[5].mxu0  ;;  %v672_v16 = vpop.f32.mrb[4].mxu1 }
 0x118   :  { %v842_v17 = vadd.f32 %v841_v15, %v840_v14  ;;  %v843_v18 = vpop.f32.mrb[6].mxu0  ;;  %v873_v19 = vpop.f32.mrb[5].mxu1 }
 0x119   :  { %v844_v20 = vpop.f32.mrb[7].mxu0  ;;  %v675_v21 = vpop.f32.mrb[6].mxu1 }
 0x11a   :  { %v632_v22 = vadd.f32 %v842_v17, %v591_v11  ;;  %v845_v23 = vadd.f32 %v844_v20, %v843_v18  ;;  %v874_v24 = vpop.f32.mrb[7].mxu1 }
 0x11c   :  { %v673_v25 = vadd.f32 %v672_v16, %v632_v22  ;;  %v635_v26 = vadd.f32 %v845_v23, %v594_v13 }
 0x11e   :  { %688 = vst [vmem:[%s1179_s2] sm:$0xff] %v673_v25  ;;  %v676_v27 = vadd.f32 %v675_v21, %v635_v26  ;;  %690 = vadd.xlane.f32.xlu0 %v673_v25  ;;  %v697_v28 = vmul.f32 %v673_v25, %v673_v25 }
 0x120   :  { %689 = vst [vmem:[%s1179_s2 + $0x8] sm:$0xff] %v676_v27  ;;  %699 = vadd.xlane.f32.xlu1 %v697_v28  ;;  %v698_v29 = vmul.f32 %v676_v27, %v676_v27 }
 0x122   :  { %692 = vadd.xlane.f32.xlu0 %v676_v27 }
 0x124   :  { %701 = vadd.xlane.f32.xlu1 %v698_v29 }
 0x1ab   :  { %v691_v30 = vpop.xlane.xlu0 %690 }
 0x1ac   :  { %695 = vst.msk [vmem:[%s1180_s3] sm:$0xff] %vm694_vm1, %v691_v30 }
 0x1ad   :  { %v700_v31 = vpop.xlane.xlu1 %699 }
 0x1ae   :  { %703 = vst.msk [vmem:[%s1181_s4] sm:$0xff] %vm694_vm1, %v700_v31 }
 0x1af   :  { %v693_v32 = vpop.xlane.xlu0 %692 }
 0x1b0   :  { %696 = vst.msk [vmem:[%s1180_s3 + $0x8] sm:$0xff] %vm694_vm1, %v693_v32 }
 0x1b1   :  { %v702_v33 = vpop.xlane.xlu1 %701 }
 0x1b2   :  { %704 = vst.msk [vmem:[%s1181_s4 + $0x8] sm:$0xff] %vm694_vm1, %v702_v33 }

// kernel: _lambda_.7
= control target key start
LH: loop header
LB: loop body
LE: loop exit
PB: predicated region body
PF: predicated region fallthrough
CT: control target
= control target key end

     0   :  { %vm327_vm0 = vcmask 7168   ;;  %s673_s1 = inlined_call_operand.vmem [shape: bf16[256,128], index: 1, kind: input, shape index: {}]   ;;  %s674_s0 = inlined_call_operand.vmem [shape: bf16[64,256], index: 0, kind: input, shape index: {}]   ;;  %s675_s2 = inlined_call_operand.vmem [shape: f32[64,128], index: 2, kind: output, shape index: {0}]   ;;  %s676_s3 = inlined_call_operand.vmem [shape: f32[1,64,1], index: 3, kind: output, shape index: {1}]   ;;  %s677_s4 = inlined_call_operand.vmem [shape: f32[1,64,1], index: 4, kind: output, shape index: {2}]  }
   0x1   :  { %v460_v0 = vld [vmem:[%s673_s1 + $0x40] sm:$0xff]   ;;  %v462_v2 = vld [vmem:[%s673_s1 + $0x48] sm:$0xff]   ;;  %v464_v4 = vld [vmem:[%s673_s1 + $0x50] sm:$0xff]  }
   0x2   :  { %v461_v1 = vld [vmem:[%s673_s1] sm:$0xff]   ;;  %404 = vmatprep.subr.bf16.mxu0 %v460_v0  ;;  %444 = vmatprep.subr.bf16.mxu1 %v460_v0  ;;  %v463_v3 = vld [vmem:[%s673_s1 + $0x8] sm:$0xff]   ;;  %v465_v5 = vld [vmem:[%s673_s1 + $0x10] sm:$0xff]  }
   0x3   :  { %405 = vmatpush3.bf16.msra.mxu0 %v461_v1  ;;  %452 = vmatpush3.bf16.msra.mxu1 %v461_v1  ;;  %v466_v6 = vld [vmem:[%s673_s1 + $0x58] sm:$0xff]   ;;  %v468_v8 = vld [vmem:[%s673_s1 + $0x60] sm:$0xff]   ;;  %v470_v10 = vld [vmem:[%s673_s1 + $0x68] sm:$0xff]  }
   0x4   :  { %406 = vmatprep.subr.bf16.mxu0 %v462_v2  ;;  %445 = vmatprep.subr.bf16.mxu1 %v462_v2  ;;  %v467_v7 = vld [vmem:[%s673_s1 + $0x18] sm:$0xff]   ;;  %v469_v9 = vld [vmem:[%s673_s1 + $0x20] sm:$0xff]   ;;  %v471_v13 = vld [vmem:[%s673_s1 + $0x28] sm:$0xff]  }
   0x5   :  { %v478_v11 = vld [vmem:[%s674_s0 + $0x4] ss:$8 sps:$4 sm:$0xff]   ;;  %v472_v14 = vld [vmem:[%s673_s1 + $0x70] sm:$0xff]   ;;  %v474_v16 = vld [vmem:[%s673_s1 + $0x78] sm:$0xff]  }
   0x6   :  { %v481_v12 = vld [vmem:[%s674_s0 + $0x24] ss:$8 sps:$4 sm:$0xff]   ;;  %243 = vmatprep.mubr.bf16.mxu0 %v478_v11  ;;  %v473_v15 = vld [vmem:[%s673_s1 + $0x30] sm:$0xff]   ;;  %v475_v17 = vld [vmem:[%s673_s1 + $0x38] sm:$0xff]  }
   0x7   :  { %407 = vmatpush3.bf16.msra.mxu0 %v463_v3  ;;  %453 = vmatpush3.bf16.msra.mxu1 %v463_v3  ;;  %v476_v18 = vld [vmem:[%s674_s0] ss:$8 sps:$4 sm:$0xff]   ;;  %v482_v20 = vld [vmem:[%s674_s0 + $0x14] ss:$8 sps:$4 sm:$0xff]   ;;  %v484_v22 = vld [vmem:[%s674_s0 + $0x10] ss:$8 sps:$4 sm:$0xff]  }
   0x8   :  { %408 = vmatprep.subr.bf16.mxu0 %v464_v4  ;;  %446 = vmatprep.subr.bf16.mxu1 %v464_v4  ;;  %v479_v19 = vld [vmem:[%s674_s0 + $0x20] ss:$8 sps:$4 sm:$0xff]   ;;  %v485_v21 = vld [vmem:[%s674_s0 + $0x34] ss:$8 sps:$4 sm:$0xff]   ;;  %v487_v23 = vld [vmem:[%s674_s0 + $0x30] ss:$8 sps:$4 sm:$0xff]  }
   0x9   :  { %259 = vmatprep.mubr.bf16.mxu1 %v481_v12 }
   0xb   :  { %409 = vmatpush3.bf16.msra.mxu0 %v465_v5  ;;  %454 = vmatpush3.bf16.msra.mxu1 %v465_v5 }
   0xc   :  { %410 = vmatprep.subr.bf16.mxu0 %v466_v6  ;;  %447 = vmatprep.subr.bf16.mxu1 %v466_v6 }
   0xf   :  { %411 = vmatpush3.bf16.msra.mxu0 %v467_v7  ;;  %455 = vmatpush3.bf16.msra.mxu1 %v467_v7 }
  0x10   :  { %412 = vmatprep.subr.bf16.mxu0 %v468_v8  ;;  %448 = vmatprep.subr.bf16.mxu1 %v468_v8 }
  0x13   :  { %413 = vmatpush3.bf16.msra.mxu0 %v469_v9  ;;  %456 = vmatpush3.bf16.msra.mxu1 %v469_v9 }
  0x14   :  { %414 = vmatprep.subr.bf16.mxu0 %v470_v10  ;;  %449 = vmatprep.subr.bf16.mxu1 %v470_v10 }
  0x17   :  { %415 = vmatpush3.bf16.msra.mxu0 %v471_v13  ;;  %457 = vmatpush3.bf16.msra.mxu1 %v471_v13 }
  0x18   :  { %416 = vmatprep.subr.bf16.mxu0 %v472_v14  ;;  %450 = vmatprep.subr.bf16.mxu1 %v472_v14 }
  0x1b   :  { %417 = vmatpush3.bf16.msra.mxu0 %v473_v15  ;;  %458 = vmatpush3.bf16.msra.mxu1 %v473_v15 }
  0x1c   :  { %418 = vmatprep.subr.bf16.mxu0 %v474_v16  ;;  %451 = vmatprep.subr.bf16.mxu1 %v474_v16 }
  0x1f   :  { %419 = vmatpush3.bf16.msra.mxu0 %v475_v17  ;;  %459 = vmatpush3.bf16.msra.mxu1 %v475_v17 }
  0x22   :  { %244 = vmatmul.mubr.bf16.vlgmr.msra.gmra.mrb[0].mxu0 %v476_v18  ;;  %260 = vmatmul.mubr.bf16.vlgmr.msra.gmra.mrb[0].mxu1 %v479_v19 }
  0x23   :  { %251 = vmatprep.mubr.bf16.mxu0 %v482_v20  ;;  %267 = vmatprep.mubr.bf16.mxu1 %v485_v21 }
  0x2a   :  { %252 = vmatmul.mubr.bf16.gmra.mrb[4].mxu0 %v484_v22  ;;  %268 = vmatmul.mubr.bf16.gmra.mrb[4].mxu1 %v487_v23 }
  0xf5   :  { %v420_v24 = vpop.f32.mrb[0].mxu0  ;;  %v432_v25 = vpop.f32.mrb[0].mxu1 }
  0xf6   :  { %v421_v26 = vpop.f32.mrb[1].mxu0  ;;  %v433_v27 = vpop.f32.mrb[1].mxu1 }
  0xf7   :  { %v422_v28 = vadd.f32 %v421_v26, %v420_v24  ;;  %v434_v29 = vadd.f32 %v433_v27, %v432_v25  ;;  %v423_v30 = vpop.f32.mrb[2].mxu0  ;;  %v435_v31 = vpop.f32.mrb[2].mxu1 }
  0xf8   :  { %v424_v32 = vpop.f32.mrb[3].mxu0  ;;  %v436_v33 = vpop.f32.mrb[3].mxu1 }
  0xf9   :  { %303 = vst [vmem:[%s675_s2] sm:$0xff] %v422_v28  ;;  %307 = vst [vmem:[%s675_s2 + $0x20] sm:$0xff] %v434_v29  ;;  %v425_v34 = vadd.f32 %v424_v32, %v423_v30  ;;  %v437_v35 = vadd.f32 %v436_v33, %v435_v31  ;;  %311 = vadd.xlane.f32.xlu0 %v422_v28  ;;  %v336_v50 = vmul.f32 %v422_v28, %v422_v28 }
  0xfa   :  { %v340_v51 = vmul.f32 %v434_v29, %v434_v29 }
  0xfb   :  { %304 = vst [vmem:[%s675_s2 + $0x8] sm:$0xff] %v425_v34  ;;  %308 = vst [vmem:[%s675_s2 + $0x28] sm:$0xff] %v437_v35  ;;  %321 = vadd.xlane.f32.xlu1 %v437_v35  ;;  %v337_v36 = vmul.f32 %v425_v34, %v425_v34  ;;  %v341_v48 = vmul.f32 %v437_v35, %v437_v35 }
  0xfd   :  { %319 = vadd.xlane.f32.xlu0 %v434_v29  ;;  %v426_v37 = vpop.f32.mrb[4].mxu0  ;;  %v438_v38 = vpop.f32.mrb[4].mxu1 }
  0xfe   :  { %v427_v39 = vpop.f32.mrb[5].mxu0  ;;  %v439_v40 = vpop.f32.mrb[5].mxu1 }
  0xff   :  { %346 = vadd.xlane.f32.xlu1 %v337_v36  ;;  %v428_v41 = vadd.f32 %v427_v39, %v426_v37  ;;  %v429_v42 = vpop.f32.mrb[6].mxu0  ;;  %v440_v43 = vadd.f32 %v439_v40, %v438_v38  ;;  %v441_v44 = vpop.f32.mrb[6].mxu1 }
 0x100   :  { %v430_v45 = vpop.f32.mrb[7].mxu0  ;;  %v442_v46 = vpop.f32.mrb[7].mxu1 }
 0x101   :  { %305 = vst [vmem:[%s675_s2 + $0x10] sm:$0xff] %v428_v41  ;;  %313 = vadd.xlane.f32.xlu0 %v425_v34  ;;  %v431_v47 = vadd.f32 %v430_v45, %v429_v42  ;;  %309 = vst [vmem:[%s675_s2 + $0x30] sm:$0xff] %v440_v43  ;;  %v443_v49 = vadd.f32 %v442_v46, %v441_v44  ;;  %v338_v52 = vmul.f32 %v428_v41, %v428_v41 }
 0x102   :  { %v342_v54 = vmul.f32 %v440_v43, %v440_v43 }
 0x103   :  { %306 = vst [vmem:[%s675_s2 + $0x18] sm:$0xff] %v431_v47  ;;  %354 = vadd.xlane.f32.xlu1 %v341_v48  ;;  %310 = vst [vmem:[%s675_s2 + $0x38] sm:$0xff] %v443_v49  ;;  %v339_v53 = vmul.f32 %v431_v47, %v431_v47  ;;  %v343_v55 = vmul.f32 %v443_v49, %v443_v49 }
 0x105   :  { %344 = vadd.xlane.f32.xlu0 %v336_v50 }
 0x107   :  { %315 = vadd.xlane.f32.xlu1 %v428_v41 }
 0x109   :  { %352 = vadd.xlane.f32.xlu0 %v340_v51 }
 0x10b   :  { %317 = vadd.xlane.f32.xlu1 %v431_v47 }
 0x10d   :  { %323 = vadd.xlane.f32.xlu0 %v440_v43 }
 0x10f   :  { %325 = vadd.xlane.f32.xlu1 %v443_v49 }
 0x111   :  { %348 = vadd.xlane.f32.xlu0 %v338_v52 }
 0x113   :  { %350 = vadd.xlane.f32.xlu1 %v339_v53 }
 0x115   :  { %356 = vadd.xlane.f32.xlu0 %v342_v54 }
 0x117   :  { %358 = vadd.xlane.f32.xlu1 %v343_v55 }
 0x186   :  { %v312_v56 = vpop.xlane.xlu0 %311 }
 0x187   :  { %328 = vst.msk [vmem:[%s676_s3] sm:$0xff] %vm327_vm0, %v312_v56 }
 0x188   :  { %v322_v57 = vpop.xlane.xlu1 %321 }
 0x189   :  { %333 = vst.msk [vmem:[%s676_s3 + $0x28] sm:$0xff] %vm327_vm0, %v322_v57 }
 0x18a   :  { %v320_v58 = vpop.xlane.xlu0 %319 }
 0x18b   :  { %332 = vst.msk [vmem:[%s676_s3 + $0x20] sm:$0xff] %vm327_vm0, %v320_v58 }
 0x18c   :  { %v347_v59 = vpop.xlane.xlu1 %346 }
 0x18d   :  { %361 = vst.msk [vmem:[%s677_s4 + $0x8] sm:$0xff] %vm327_vm0, %v347_v59 }
 0x18e   :  { %v314_v60 = vpop.xlane.xlu0 %313 }
 0x18f   :  { %329 = vst.msk [vmem:[%s676_s3 + $0x8] sm:$0xff] %vm327_vm0, %v314_v60 }
 0x190   :  { %v355_v61 = vpop.xlane.xlu1 %354 }
 0x191   :  { %365 = vst.msk [vmem:[%s677_s4 + $0x28] sm:$0xff] %vm327_vm0, %v355_v61 }
 0x192   :  { %v345_v62 = vpop.xlane.xlu0 %344 }
 0x193   :  { %360 = vst.msk [vmem:[%s677_s4] sm:$0xff] %vm327_vm0, %v345_v62 }
 0x194   :  { %v316_v63 = vpop.xlane.xlu1 %315 }
 0x195   :  { %330 = vst.msk [vmem:[%s676_s3 + $0x10] sm:$0xff] %vm327_vm0, %v316_v63 }
 0x196   :  { %v353_v0 = vpop.xlane.xlu0 %352 }
 0x197   :  { %364 = vst.msk [vmem:[%s677_s4 + $0x20] sm:$0xff] %vm327_vm0, %v353_v0 }
 0x198   :  { %v318_v1 = vpop.xlane.xlu1 %317 }
 0x199   :  { %331 = vst.msk [vmem:[%s676_s3 + $0x18] sm:$0xff] %vm327_vm0, %v318_v1 }
 0x19a   :  { %v324_v2 = vpop.xlane.xlu0 %323 }
 0x19b   :  { %334 = vst.msk [vmem:[%s676_s3 + $0x30] sm:$0xff] %vm327_vm0, %v324_v2 }
 0x19c   :  { %v326_v3 = vpop.xlane.xlu1 %325 }
 0x19d   :  { %335 = vst.msk [vmem:[%s676_s3 + $0x38] sm:$0xff] %vm327_vm0, %v326_v3 }
 0x19e   :  { %v349_v4 = vpop.xlane.xlu0 %348 }
 0x19f   :  { %362 = vst.msk [vmem:[%s677_s4 + $0x10] sm:$0xff] %vm327_vm0, %v349_v4 }
 0x1a0   :  { %v351_v5 = vpop.xlane.xlu1 %350 }
 0x1a1   :  { %363 = vst.msk [vmem:[%s677_s4 + $0x18] sm:$0xff] %vm327_vm0, %v351_v5 }
 0x1a2   :  { %v357_v6 = vpop.xlane.xlu0 %356 }
 0x1a3   :  { %366 = vst.msk [vmem:[%s677_s4 + $0x30] sm:$0xff] %vm327_vm0, %v357_v6 }
 0x1a4   :  { %v359_v7 = vpop.xlane.xlu1 %358 }
 0x1a5   :  { %367 = vst.msk [vmem:[%s677_s4 + $0x38] sm:$0xff] %vm327_vm0, %v359_v7 }

// kernel: squeeze.8
= control target key start
LH: loop header
LB: loop body
LE: loop exit
PB: predicated region body
PF: predicated region fallthrough
CT: control target
= control target key end

     0   :  { %s66_s8 = smov 104   ;;  %vm7_vm0 = vcmask 64512   ;;  %s67_s11 = smov 112   ;;  %s117_s0 = inlined_call_operand.vmem [shape: f32[64], index: 0, kind: input, shape index: {}]   ;;  %s118_s1 = inlined_call_operand.vmem [shape: f32[8,8], index: 1, kind: output, shape index: {}]  }
   0x1   :  { %v4_v0 = vld [vmem:[%s117_s0] sm:$0x1]  ;;  %s65_s0 = smov 120   ;;  %s68_s12 = smov 96  }
   0x2   :  { %5 = vst [vmem:[#allocation0] sm:$0x1] %v4_v0  ;;  %s69_s13 = smov 88   ;;  %s70_s14 = smov 80  }
   0x3   :  { %s71_s15 = smov 72  }
   0x9   :  { %v9_v1 = vld [vmem:[#allocation0] sm:$0x1]  }
   0xa   :  { %v21_v2 = vld [vmem:[#allocation0] sm:$0x1]   ;;  %10 = vrot.lane.b32.xlu0 %v9_v1, %s65_s0 }
   0xb   :  { %22 = vrot.lane.b32.xlu1 %v21_v2, %s66_s8  ;;  %v15_v3 = vld [vmem:[#allocation0] sm:$0x1]  }
   0xc   :  { %v27_v4 = vld [vmem:[#allocation0] sm:$0x1]  }
   0xd   :  { %v6_v5 = vld [vmem:[#allocation0] sm:$0x1]  }
   0xe   :  { %8 = vst.msk [vmem:[%s118_s1] sm:$0x1] %vm7_vm0, %v6_v5   ;;  %16 = vrot.lane.b32.xlu0 %v15_v3, %s67_s11  ;;  %v33_v6 = vld [vmem:[#allocation0] sm:$0x1]  }
   0xf   :  { %28 = vrot.lane.b32.xlu1 %v27_v4, %s68_s12  ;;  %v39_v7 = vld [vmem:[#allocation0] sm:$0x1]  }
  0x10   :  { %v45_v8 = vld [vmem:[#allocation0] sm:$0x1]  }
  0x12   :  { %34 = vrot.lane.b32.xlu0 %v33_v6, %s69_s13 }
  0x13   :  { %40 = vrot.lane.b32.xlu1 %v39_v7, %s70_s14 }
  0x16   :  { %46 = vrot.lane.b32.xlu0 %v45_v8, %s71_s15 }
  0x7c   :  { %v11_v9 = vpop.permute.xlu0 %10  }
  0x7d   :  { %v23_v10 = vpop.permute.xlu1 %22   ;;  %51 = vst.msk [vmem:[%s118_s1 + $0x1] sm:$0x1] %vm7_vm0, %v11_v9  }
  0x7e   :  { %53 = vst.msk [vmem:[%s118_s1 + $0x3] sm:$0x1] %vm7_vm0, %v23_v10  }
  0x80   :  { %v17_v11 = vpop.permute.xlu0 %16  }
  0x81   :  { %v29_v12 = vpop.permute.xlu1 %28   ;;  %52 = vst.msk [vmem:[%s118_s1 + $0x2] sm:$0x1] %vm7_vm0, %v17_v11  }
  0x82   :  { %54 = vst.msk [vmem:[%s118_s1 + $0x4] sm:$0x1] %vm7_vm0, %v29_v12  }
  0x84   :  { %v35_v13 = vpop.permute.xlu0 %34  }
  0x85   :  { %v41_v14 = vpop.permute.xlu1 %40   ;;  %55 = vst.msk [vmem:[%s118_s1 + $0x5] sm:$0x1] %vm7_vm0, %v35_v13  }
  0x86   :  { %56 = vst.msk [vmem:[%s118_s1 + $0x6] sm:$0x1] %vm7_vm0, %v41_v14  }
  0x88   :  { %v47_v15 = vpop.permute.xlu0 %46  }
  0x89   :  { %57 = vst.msk [vmem:[%s118_s1 + $0x7] sm:$0x1] %vm7_vm0, %v47_v15  }

// kernel: tile.23
= control target key start
LH: loop header
LB: loop body
LE: loop exit
PB: predicated region body
PF: predicated region fallthrough
CT: control target
= control target key end

     0   :  { %s22_s0 = inlined_call_operand.vmem [shape: f32[8], index: 0, kind: input, shape index: {}]   ;;  %s23_s1 = inlined_call_operand.vmem [shape: f32[8,8], index: 1, kind: output, shape index: {}]  }
   0x1   :  { %v4_v0 = vld [vmem:[%s22_s0] ss:$0 sm:$0xff] }
   0x2   :  { %5 = vst [vmem:[%s23_s1] sm:$0xff] %v4_v0 }

// kernel: tile.0
= control target key start
LH: loop header
LB: loop body
LE: loop exit
PB: predicated region body
PF: predicated region fallthrough
CT: control target
= control target key end

     0   :  { %vm3_vm0 = vcmask 7168   ;;  %s84_s8 = smov 125   ;;  %s85_s13 = smov 126   ;;  %s167_s0 = inlined_call_operand.vmem [shape: f32[8,8], index: 0, kind: input, shape index: {}]   ;;  %s168_s1 = inlined_call_operand.vmem [shape: f32[64,1], index: 1, kind: output, shape index: {}]  }
   0x1   :  { %v6_v0 = vld [vmem:[%s167_s0] sm:$0xff]   ;;  %s83_s0 = smov 127   ;;  %s86_s14 = smov 124  }
   0x2   :  { %7 = vrot.lane.b32.xlu0 %v6_v0, %s83_s0  ;;  %23 = vrot.lane.b32.xlu1 %v6_v0, %s84_s8  ;;  %4 = vst.msk [vmem:[%s168_s1] ss:$8 sm:$0xf] %vm3_vm0, %v6_v0   ;;  %5 = vst.msk [vmem:[%s168_s1] ss:$8 sm:$0xf0] %vm3_vm0, %v6_v0  }
   0x3   :  { %s87_s15 = smov 123   ;;  %s88_s16 = smov 122  }
   0x4   :  { %s89_s17 = smov 121  }
   0x6   :  { %15 = vrot.lane.b32.xlu0 %v6_v0, %s85_s13  ;;  %31 = vrot.lane.b32.xlu1 %v6_v0, %s86_s14 }
   0xa   :  { %39 = vrot.lane.b32.xlu0 %v6_v0, %s87_s15  ;;  %47 = vrot.lane.b32.xlu1 %v6_v0, %s88_s16 }
   0xe   :  { %55 = vrot.lane.b32.xlu0 %v6_v0, %s89_s17 }
  0x74   :  { %v8_v1 = vpop.permute.xlu0 %7   ;;  %v24_v2 = vpop.permute.xlu1 %23  }
  0x75   :  { %62 = vst.msk [vmem:[%s168_s1 + $0x1] ss:$8 sm:$0xf] %vm3_vm0, %v8_v1   ;;  %63 = vst.msk [vmem:[%s168_s1 + $0x1] ss:$8 sm:$0xf0] %vm3_vm0, %v8_v1  }
  0x76   :  { %66 = vst.msk [vmem:[%s168_s1 + $0x3] ss:$8 sm:$0xf] %vm3_vm0, %v24_v2   ;;  %67 = vst.msk [vmem:[%s168_s1 + $0x3] ss:$8 sm:$0xf0] %vm3_vm0, %v24_v2  }
  0x78   :  { %v16_v3 = vpop.permute.xlu0 %15   ;;  %v32_v4 = vpop.permute.xlu1 %31  }
  0x79   :  { %64 = vst.msk [vmem:[%s168_s1 + $0x2] ss:$8 sm:$0xf] %vm3_vm0, %v16_v3   ;;  %65 = vst.msk [vmem:[%s168_s1 + $0x2] ss:$8 sm:$0xf0] %vm3_vm0, %v16_v3  }
  0x7a   :  { %68 = vst.msk [vmem:[%s168_s1 + $0x4] ss:$8 sm:$0xf] %vm3_vm0, %v32_v4   ;;  %69 = vst.msk [vmem:[%s168_s1 + $0x4] ss:$8 sm:$0xf0] %vm3_vm0, %v32_v4  }
  0x7c   :  { %v40_v5 = vpop.permute.xlu0 %39   ;;  %v48_v6 = vpop.permute.xlu1 %47  }
  0x7d   :  { %70 = vst.msk [vmem:[%s168_s1 + $0x5] ss:$8 sm:$0xf] %vm3_vm0, %v40_v5   ;;  %71 = vst.msk [vmem:[%s168_s1 + $0x5] ss:$8 sm:$0xf0] %vm3_vm0, %v40_v5  }
  0x7e   :  { %72 = vst.msk [vmem:[%s168_s1 + $0x6] ss:$8 sm:$0xf] %vm3_vm0, %v48_v6   ;;  %73 = vst.msk [vmem:[%s168_s1 + $0x6] ss:$8 sm:$0xf0] %vm3_vm0, %v48_v6  }
  0x80   :  { %v56_v7 = vpop.permute.xlu0 %55  }
  0x81   :  { %74 = vst.msk [vmem:[%s168_s1 + $0x7] ss:$8 sm:$0xf] %vm3_vm0, %v56_v7   ;;  %75 = vst.msk [vmem:[%s168_s1 + $0x7] ss:$8 sm:$0xf0] %vm3_vm0, %v56_v7  }

// kernel: _lambda_.8
= control target key start
LH: loop header
LB: loop body
LE: loop exit
PB: predicated region body
PF: predicated region fallthrough
CT: control target
= control target key end

     0   :  { %v295_v0 = vmov 0   ;;  %vm167_vm0 = vcmask 523264   ;;  %vm235_vm1 = vcmask 7168   ;;  %s455_s1 = inlined_call_operand.vmem [shape: f32[64,1], index: 1, kind: input, shape index: {}]   ;;  %s456_s0 = inlined_call_operand.vmem [shape: f32[64,1], index: 0, kind: input, shape index: {}]   ;;  %s457_s2 = inlined_call_operand.vmem [shape: bf16[32,64], index: 2, kind: input, shape index: {}]   ;;  %s458_s3 = inlined_call_operand.vmem [shape: f32[64,128], index: 3, kind: input, shape index: {}]   ;;  %s459_s4 = inlined_call_operand.vmem [shape: f32[32,128], index: 4, kind: output, shape index: {0}]   ;;  %s460_s5 = inlined_call_operand.vmem [shape: f32[1,32,1], index: 5, kind: output, shape index: {1}]   ;;  %s461_s6 = inlined_call_operand.vmem [shape: f32[1,32,1], index: 6, kind: output, shape index: {2}]  }
   0x1   :  { %292 = vset.pattern.permute.xlu1 %v295_v0  ;;  %291 = vset.pattern.permute.xlu0 %v295_v0  ;;  %v85_v1 = vld [vmem:[%s455_s1] sm:$0xff]  ;;  %v86_v3 = vld [vmem:[%s455_s1 + $0x8] sm:$0xff]  ;;  %v32_v5 = vld [vmem:[%s456_s0 + $0x18] sm:$0xff] }
   0x2   :  { %v29_v2 = vld [vmem:[%s456_s0] sm:$0xff]  ;;  %95 = vperm.xlu1 %292, %v85_v1   ;;  %v30_v4 = vld [vmem:[%s456_s0 + $0x8] sm:$0xff]  ;;  %v31_v6 = vld [vmem:[%s456_s0 + $0x10] sm:$0xff] }
   0x3   :  { %39 = vperm.xlu0 %291, %v29_v2   ;;  %v88_v7 = vld [vmem:[%s455_s1 + $0x18] sm:$0xff]  ;;  %v87_v8 = vld [vmem:[%s455_s1 + $0x10] sm:$0xff]  ;;  %v34_v9 = vld [vmem:[%s456_s0 + $0x28] sm:$0xff] }
   0x4   :  { %v33_v10 = vld [vmem:[%s456_s0 + $0x20] sm:$0xff]  ;;  %v90_v11 = vld [vmem:[%s455_s1 + $0x28] sm:$0xff]  ;;  %v36_v13 = vld [vmem:[%s456_s0 + $0x38] sm:$0xff] }
   0x5   :  { %v89_v12 = vld [vmem:[%s455_s1 + $0x20] sm:$0xff]  ;;  %v35_v14 = vld [vmem:[%s456_s0 + $0x30] sm:$0xff]  ;;  %v92_v15 = vld [vmem:[%s455_s1 + $0x38] sm:$0xff] }
   0x6   :  { %100 = vperm.xlu1 %292, %v86_v3   ;;  %v91_v16 = vld [vmem:[%s455_s1 + $0x30] sm:$0xff]  ;;  %v293_v17 = vld [vmem:[%s457_s2] sm:$0xff]   ;;  %v22_v22 = vld [vmem:[%s458_s3 + $0x8] sm:$0xff] }
   0x7   :  { %44 = vperm.xlu0 %291, %v30_v4   ;;  %286 = vmatprep.mubr.msk.bf16.mxu0 %vm167_vm0, %v293_v17  ;;  %v21_v18 = vld [vmem:[%s458_s3] sm:$0xff]  ;;  %v24_v28 = vld [vmem:[%s458_s3 + $0x18] sm:$0xff]  ;;  %v23_v30 = vld [vmem:[%s458_s3 + $0x10] sm:$0xff] }
   0x8   :  { %v26_v43 = vld [vmem:[%s458_s3 + $0x28] sm:$0xff]  ;;  %v25_v45 = vld [vmem:[%s458_s3 + $0x20] sm:$0xff]  ;;  %v28_v56 = vld [vmem:[%s458_s3 + $0x38] sm:$0xff] }
   0x9   :  { %v27_v58 = vld [vmem:[%s458_s3 + $0x30] sm:$0xff] }
   0xa   :  { %54 = vperm.xlu1 %292, %v32_v5  }
   0xb   :  { %49 = vperm.xlu0 %291, %v31_v6   ;;  %v294_v6 = vld [vmem:[%s457_s2 + $0x8] sm:$0xff]  }
   0xe   :  { %110 = vperm.xlu1 %292, %v88_v7  }
   0xf   :  { %105 = vperm.xlu0 %291, %v87_v8  }
  0x12   :  { %64 = vperm.xlu1 %292, %v34_v9  }
  0x13   :  { %59 = vperm.xlu0 %291, %v33_v10  }
  0x16   :  { %120 = vperm.xlu1 %292, %v90_v11  }
  0x17   :  { %115 = vperm.xlu0 %291, %v89_v12  }
  0x1a   :  { %74 = vperm.xlu1 %292, %v36_v13  }
  0x1b   :  { %69 = vperm.xlu0 %291, %v35_v14  }
  0x1e   :  { %130 = vperm.xlu1 %292, %v92_v15  }
  0x1f   :  { %125 = vperm.xlu0 %291, %v91_v16  }
  0x81   :  { %v96_v19 = vpop.permute.xlu1 %95 }
  0x82   :  { %v40_v20 = vpop.permute.xlu0 %39 }
  0x83   :  { %v77_v21 = vmul.f32 %v40_v20, %v21_v18 }
  0x85   :  { %v101_v23 = vpop.permute.xlu1 %100  ;;  %v133_v25 = vadd.f32 %v96_v19, %v77_v21 }
  0x86   :  { %v45_v24 = vpop.permute.xlu0 %44 }
  0x87   :  { %v78_v26 = vmul.f32 %v45_v24, %v22_v22  ;;  %v141_v32 = vmax.f32 %v133_v25, 0.0 }
  0x89   :  { %v134_v27 = vadd.f32 %v101_v23, %v78_v26  ;;  %v55_v29 = vpop.permute.xlu1 %54 }
  0x8a   :  { %v50_v31 = vpop.permute.xlu0 %49  ;;  %v80_v34 = vmul.f32 %v55_v29, %v24_v28 }
  0x8b   :  { %v142_v33 = vmax.f32 %v134_v27, 0.0  ;;  %v79_v35 = vmul.f32 %v50_v31, %v23_v30 }
  0x8d   :  { %v153_v36 = vpack.c.bf16 %v142_v33, %v141_v32  ;;  %v111_v37 = vpop.permute.xlu1 %110 }
  0x8e   :  { %v106_v38 = vpop.permute.xlu0 %105  ;;  %v136_v39 = vadd.f32 %v111_v37, %v80_v34 }
  0x8f   :  { %v135_v40 = vadd.f32 %v106_v38, %v79_v35  ;;  %278 = vmatprep.subr.bf16.mxu0 %v153_v36 }
  0x90   :  { %279 = vmatpush3.bf16.msra.mxu0 %v153_v36  ;;  %v144_v41 = vmax.f32 %v136_v39, 0.0 }
  0x91   :  { %v143_v42 = vmax.f32 %v135_v40, 0.0  ;;  %v65_v44 = vpop.permute.xlu1 %64 }
  0x92   :  { %v60_v46 = vpop.permute.xlu0 %59  ;;  %v82_v48 = vmul.f32 %v65_v44, %v26_v43 }
  0x93   :  { %v154_v47 = vpack.c.bf16 %v144_v41, %v143_v42  ;;  %v81_v49 = vmul.f32 %v60_v46, %v25_v45 }
  0x95   :  { %280 = vmatprep.subr.bf16.mxu0 %v154_v47  ;;  %v121_v50 = vpop.permute.xlu1 %120 }
  0x96   :  { %281 = vmatpush3.bf16.msra.mxu0 %v154_v47  ;;  %v116_v51 = vpop.permute.xlu0 %115  ;;  %v138_v52 = vadd.f32 %v121_v50, %v82_v48 }
  0x97   :  { %v137_v53 = vadd.f32 %v116_v51, %v81_v49 }
  0x98   :  { %v146_v54 = vmax.f32 %v138_v52, 0.0 }
  0x99   :  { %v145_v55 = vmax.f32 %v137_v53, 0.0  ;;  %v75_v57 = vpop.permute.xlu1 %74 }
  0x9a   :  { %v70_v59 = vpop.permute.xlu0 %69  ;;  %v84_v61 = vmul.f32 %v75_v57, %v28_v56 }
  0x9b   :  { %v155_v60 = vpack.c.bf16 %v146_v54, %v145_v55  ;;  %v83_v62 = vmul.f32 %v70_v59, %v27_v58 }
  0x9d   :  { %282 = vmatprep.subr.bf16.mxu0 %v155_v60  ;;  %v131_v63 = vpop.permute.xlu1 %130 }
  0x9e   :  { %283 = vmatpush3.bf16.msra.mxu0 %v155_v60  ;;  %v126_v0 = vpop.permute.xlu0 %125  ;;  %v140_v1 = vadd.f32 %v131_v63, %v84_v61 }
  0x9f   :  { %v139_v2 = vadd.f32 %v126_v0, %v83_v62 }
  0xa0   :  { %v148_v3 = vmax.f32 %v140_v1, 0.0 }
  0xa1   :  { %v147_v4 = vmax.f32 %v139_v2, 0.0 }
  0xa3   :  { %v156_v5 = vpack.c.bf16 %v148_v3, %v147_v4 }
  0xa5   :  { %284 = vmatprep.subr.bf16.mxu0 %v156_v5 }
  0xa6   :  { %285 = vmatpush3.bf16.msra.mxu0 %v156_v5 }
  0xa9   :  { %287 = vmatmul.mubr.msk.bf16.vlgmr.msra.gmra.mrb[0].mxu0 %vm167_vm0, %v294_v6 }
 0x17c   :  { %v288_v7 = vpop.f32.mrb[0].mxu0 }
 0x17d   :  { %225 = vst [vmem:[%s459_s4 + $0x10] sm:$0xff] %v288_v7  ;;  %231 = vadd.xlane.f32.xlu0 %v288_v7  ;;  %v208_v8 = vpop.f32.mrb[1].mxu0  ;;  %v242_v12 = vmul.f32 %v288_v7, %v288_v7 }
 0x17e   :  { %223 = vst [vmem:[%s459_s4] sm:$0xff] %v208_v8  ;;  %v289_v9 = vpop.f32.mrb[2].mxu0  ;;  %v240_v11 = vmul.f32 %v208_v8, %v208_v8 }
 0x17f   :  { %226 = vst [vmem:[%s459_s4 + $0x18] sm:$0xff] %v289_v9  ;;  %v211_v10 = vpop.f32.mrb[3].mxu0  ;;  %v243_v14 = vmul.f32 %v289_v9, %v289_v9 }
 0x180   :  { %224 = vst [vmem:[%s459_s4 + $0x8] sm:$0xff] %v211_v10  ;;  %229 = vadd.xlane.f32.xlu1 %v211_v10  ;;  %v241_v13 = vmul.f32 %v211_v10, %v211_v10 }
 0x181   :  { %227 = vadd.xlane.f32.xlu0 %v208_v8 }
 0x184   :  { %244 = vadd.xlane.f32.xlu1 %v240_v11 }
 0x185   :  { %233 = vadd.xlane.f32.xlu0 %v289_v9 }
 0x188   :  { %248 = vadd.xlane.f32.xlu1 %v242_v12 }
 0x189   :  { %246 = vadd.xlane.f32.xlu0 %v241_v13 }
 0x18d   :  { %250 = vadd.xlane.f32.xlu0 %v243_v14 }
 0x20a   :  { %v232_v15 = vpop.xlane.xlu0 %231 }
 0x20b   :  { %238 = vst.msk [vmem:[%s460_s5 + $0x10] sm:$0xff] %vm235_vm1, %v232_v15 }
 0x20d   :  { %v230_v16 = vpop.xlane.xlu1 %229 }
 0x20e   :  { %237 = vst.msk [vmem:[%s460_s5 + $0x8] sm:$0xff] %vm235_vm1, %v230_v16  ;;  %v228_v17 = vpop.xlane.xlu0 %227 }
 0x20f   :  { %236 = vst.msk [vmem:[%s460_s5] sm:$0xff] %vm235_vm1, %v228_v17 }
 0x211   :  { %v245_v18 = vpop.xlane.xlu1 %244 }
 0x212   :  { %252 = vst.msk [vmem:[%s461_s6] sm:$0xff] %vm235_vm1, %v245_v18  ;;  %v234_v19 = vpop.xlane.xlu0 %233 }
 0x213   :  { %239 = vst.msk [vmem:[%s460_s5 + $0x18] sm:$0xff] %vm235_vm1, %v234_v19 }
 0x215   :  { %v249_v20 = vpop.xlane.xlu1 %248 }
 0x216   :  { %254 = vst.msk [vmem:[%s461_s6 + $0x10] sm:$0xff] %vm235_vm1, %v249_v20  ;;  %v247_v21 = vpop.xlane.xlu0 %246 }
 0x217   :  { %253 = vst.msk [vmem:[%s461_s6 + $0x8] sm:$0xff] %vm235_vm1, %v247_v21 }
 0x21a   :  { %v251_v22 = vpop.xlane.xlu0 %250 }
 0x21b   :  { %255 = vst.msk [vmem:[%s461_s6 + $0x18] sm:$0xff] %vm235_vm1, %v251_v22 }

// kernel: squeeze.10
= control target key start
LH: loop header
LB: loop body
LE: loop exit
PB: predicated region body
PF: predicated region fallthrough
CT: control target
= control target key end

     0   :  { %s66_s8 = smov 116   ;;  %vm7_vm0 = vcmask 31744   ;;  %s67_s11 = smov 120   ;;  %s117_s0 = inlined_call_operand.vmem [shape: f32[32], index: 0, kind: input, shape index: {}]   ;;  %s118_s1 = inlined_call_operand.vmem [shape: f32[8,4], index: 1, kind: output, shape index: {}]  }
   0x1   :  { %v4_v0 = vld [vmem:[%s117_s0] sm:$0x1]  ;;  %s65_s0 = smov 124   ;;  %s68_s12 = smov 112  }
   0x2   :  { %5 = vst [vmem:[#allocation0] sm:$0x1] %v4_v0  ;;  %s69_s13 = smov 108   ;;  %s70_s14 = smov 104  }
   0x3   :  { %s71_s15 = smov 100  }
   0x9   :  { %v9_v1 = vld [vmem:[#allocation0] sm:$0x1]  }
   0xa   :  { %v21_v2 = vld [vmem:[#allocation0] sm:$0x1]   ;;  %10 = vrot.lane.b32.xlu0 %v9_v1, %s65_s0 }
   0xb   :  { %22 = vrot.lane.b32.xlu1 %v21_v2, %s66_s8  ;;  %v15_v3 = vld [vmem:[#allocation0] sm:$0x1]  }
   0xc   :  { %v27_v4 = vld [vmem:[#allocation0] sm:$0x1]  }
   0xd   :  { %v6_v5 = vld [vmem:[#allocation0] sm:$0x1]  }
   0xe   :  { %8 = vst.msk [vmem:[%s118_s1] sm:$0x1] %vm7_vm0, %v6_v5   ;;  %16 = vrot.lane.b32.xlu0 %v15_v3, %s67_s11  ;;  %v33_v6 = vld [vmem:[#allocation0] sm:$0x1]  }
   0xf   :  { %28 = vrot.lane.b32.xlu1 %v27_v4, %s68_s12  ;;  %v39_v7 = vld [vmem:[#allocation0] sm:$0x1]  }
  0x10   :  { %v45_v8 = vld [vmem:[#allocation0] sm:$0x1]  }
  0x12   :  { %34 = vrot.lane.b32.xlu0 %v33_v6, %s69_s13 }
  0x13   :  { %40 = vrot.lane.b32.xlu1 %v39_v7, %s70_s14 }
  0x16   :  { %46 = vrot.lane.b32.xlu0 %v45_v8, %s71_s15 }
  0x7c   :  { %v11_v9 = vpop.permute.xlu0 %10  }
  0x7d   :  { %v23_v10 = vpop.permute.xlu1 %22   ;;  %51 = vst.msk [vmem:[%s118_s1 + $0x1] sm:$0x1] %vm7_vm0, %v11_v9  }
  0x7e   :  { %53 = vst.msk [vmem:[%s118_s1 + $0x3] sm:$0x1] %vm7_vm0, %v23_v10  }
  0x80   :  { %v17_v11 = vpop.permute.xlu0 %16  }
  0x81   :  { %v29_v12 = vpop.permute.xlu1 %28   ;;  %52 = vst.msk [vmem:[%s118_s1 + $0x2] sm:$0x1] %vm7_vm0, %v17_v11  }
  0x82   :  { %54 = vst.msk [vmem:[%s118_s1 + $0x4] sm:$0x1] %vm7_vm0, %v29_v12  }
  0x84   :  { %v35_v13 = vpop.permute.xlu0 %34  }
  0x85   :  { %v41_v14 = vpop.permute.xlu1 %40   ;;  %55 = vst.msk [vmem:[%s118_s1 + $0x5] sm:$0x1] %vm7_vm0, %v35_v13  }
  0x86   :  { %56 = vst.msk [vmem:[%s118_s1 + $0x6] sm:$0x1] %vm7_vm0, %v41_v14  }
  0x88   :  { %v47_v15 = vpop.permute.xlu0 %46  }
  0x89   :  { %57 = vst.msk [vmem:[%s118_s1 + $0x7] sm:$0x1] %vm7_vm0, %v47_v15  }

// kernel: tile.33
= control target key start
LH: loop header
LB: loop body
LE: loop exit
PB: predicated region body
PF: predicated region fallthrough
CT: control target
= control target key end

     0   :  { %s22_s0 = inlined_call_operand.vmem [shape: f32[4], index: 0, kind: input, shape index: {}]   ;;  %s23_s1 = inlined_call_operand.vmem [shape: f32[8,4], index: 1, kind: output, shape index: {}]  }
   0x1   :  { %v4_v0 = vld [vmem:[%s22_s0] ss:$0 sm:$0xff] }
   0x2   :  { %5 = vst [vmem:[%s23_s1] sm:$0xff] %v4_v0 }

// kernel: tile.2
= control target key start
LH: loop header
LB: loop body
LE: loop exit
PB: predicated region body
PF: predicated region fallthrough
CT: control target
= control target key end

     0   :  { %vm3_vm0 = vcmask 7168   ;;  %s30_s8 = smov 125   ;;  %s31_s11 = smov 126   ;;  %s57_s0 = inlined_call_operand.vmem [shape: f32[8,4], index: 0, kind: input, shape index: {}]   ;;  %s58_s1 = inlined_call_operand.vmem [shape: f32[32,1], index: 1, kind: output, shape index: {}]  }
   0x1   :  { %v5_v0 = vld [vmem:[%s57_s0] sm:$0xff]   ;;  %s29_s0 = smov 127  }
   0x2   :  { %6 = vrot.lane.b32.xlu0 %v5_v0, %s29_s0  ;;  %18 = vrot.lane.b32.xlu1 %v5_v0, %s30_s8  ;;  %4 = vst.msk [vmem:[%s58_s1] ss:$4 sm:$0xff] %vm3_vm0, %v5_v0  }
   0x6   :  { %12 = vrot.lane.b32.xlu0 %v5_v0, %s31_s11 }
  0x74   :  { %v7_v1 = vpop.permute.xlu0 %6   ;;  %v19_v2 = vpop.permute.xlu1 %18  }
  0x75   :  { %23 = vst.msk [vmem:[%s58_s1 + $0x1] ss:$4 sm:$0xff] %vm3_vm0, %v7_v1   ;;  %25 = vst.msk [vmem:[%s58_s1 + $0x3] ss:$4 sm:$0xff] %vm3_vm0, %v19_v2  }
  0x78   :  { %v13_v3 = vpop.permute.xlu0 %12  }
  0x79   :  { %24 = vst.msk [vmem:[%s58_s1 + $0x2] ss:$4 sm:$0xff] %vm3_vm0, %v13_v3  }

// kernel: _lambda_.9
= control target key start
LH: loop header
LB: loop body
LE: loop exit
PB: predicated region body
PF: predicated region fallthrough
CT: control target
= control target key end

     0   :  { %v85_v0 = vmov 0   ;;  %s154_s0 = inlined_call_operand.vmem [shape: f32[32,1], index: 0, kind: input, shape index: {}]   ;;  %s155_s1 = inlined_call_operand.vmem [shape: f32[32,1], index: 1, kind: input, shape index: {}]   ;;  %s156_s2 = inlined_call_operand.vmem [shape: f32[32,128], index: 2, kind: input, shape index: {}]   ;;  %s157_s3 = inlined_call_operand.vmem [shape: f32[32,128], index: 3, kind: output, shape index: {}]  }
   0x1   :  { %84 = vset.pattern.permute.xlu1 %v85_v0  ;;  %83 = vset.pattern.permute.xlu0 %v85_v0  ;;  %v20_v1 = vld [vmem:[%s154_s0 + $0x10] sm:$0xff]  ;;  %v18_v2 = vld [vmem:[%s154_s0] sm:$0xff]  ;;  %v21_v3 = vld [vmem:[%s154_s0 + $0x18] sm:$0xff] }
   0x2   :  { %34 = vperm.xlu1 %84, %v20_v1   ;;  %24 = vperm.xlu0 %83, %v18_v2   ;;  %v19_v4 = vld [vmem:[%s154_s0 + $0x8] sm:$0xff]  ;;  %v46_v6 = vld [vmem:[%s155_s1] sm:$0xff]  ;;  %v49_v7 = vld [vmem:[%s155_s1 + $0x18] sm:$0xff] }
   0x3   :  { %v47_v5 = vld [vmem:[%s155_s1 + $0x8] sm:$0xff]  ;;  %v48_v8 = vld [vmem:[%s155_s1 + $0x10] sm:$0xff]  ;;  %v14_v11 = vld [vmem:[%s156_s2] sm:$0xff] }
   0x4   :  { %v15_v13 = vld [vmem:[%s156_s2 + $0x8] sm:$0xff]  ;;  %v16_v17 = vld [vmem:[%s156_s2 + $0x10] sm:$0xff]  ;;  %v17_v18 = vld [vmem:[%s156_s2 + $0x18] sm:$0xff] }
   0x6   :  { %39 = vperm.xlu1 %84, %v21_v3   ;;  %29 = vperm.xlu0 %83, %v19_v4  }
   0xa   :  { %57 = vperm.xlu1 %84, %v47_v5   ;;  %52 = vperm.xlu0 %83, %v46_v6  }
   0xe   :  { %67 = vperm.xlu1 %84, %v49_v7   ;;  %62 = vperm.xlu0 %83, %v48_v8  }
  0x81   :  { %v35_v9 = vpop.permute.xlu1 %34  ;;  %v25_v10 = vpop.permute.xlu0 %24 }
  0x82   :  { %v42_v15 = vmul.f32 %v25_v10, %v14_v11  ;;  %v44_v23 = vmul.f32 %v35_v9, %v16_v17 }
  0x85   :  { %v40_v12 = vpop.permute.xlu1 %39  ;;  %v30_v14 = vpop.permute.xlu0 %29 }
  0x86   :  { %v43_v16 = vmul.f32 %v30_v14, %v15_v13  ;;  %v45_v24 = vmul.f32 %v40_v12, %v17_v18 }
  0x89   :  { %v58_v19 = vpop.permute.xlu1 %57  ;;  %v53_v20 = vpop.permute.xlu0 %52 }
  0x8a   :  { %v71_v21 = vadd.f32 %v58_v19, %v43_v16  ;;  %v70_v22 = vadd.f32 %v53_v20, %v42_v15 }
  0x8c   :  { %75 = vst [vmem:[%s157_s3 + $0x8] sm:$0xff] %v71_v21  ;;  %74 = vst [vmem:[%s157_s3] sm:$0xff] %v70_v22 }
  0x8d   :  { %v68_v25 = vpop.permute.xlu1 %67  ;;  %v63_v26 = vpop.permute.xlu0 %62 }
  0x8e   :  { %v73_v27 = vadd.f32 %v68_v25, %v45_v24  ;;  %v72_v28 = vadd.f32 %v63_v26, %v44_v23 }
  0x90   :  { %77 = vst [vmem:[%s157_s3 + $0x18] sm:$0xff] %v73_v27  ;;  %76 = vst [vmem:[%s157_s3 + $0x10] sm:$0xff] %v72_v28 }

</bundles_post_ra>
